<compile_context>
chip_gen: v7x
topology: tpu7x:2x2x1
jax: 0.10.0
libtpu: 0.0.40
codegen_flags: <defaults>
</compile_context>

<pallas_src>
import functools

import jax
import jax.numpy as jnp
from jax import lax
from jax.experimental import pallas as pl
from jax.experimental.pallas import tpu as pltpu


def _sigmoid(z):
    # sigmoid(z) == 0.5 * tanh(0.5 * z) + 0.5 -- one EUP op, numerically safe.
    return 0.5 * jnp.tanh(0.5 * z) + 0.5


def _round_up(n, m):
    return ((n + m - 1) // m) * m


def cae2_fwd_kernel(x_ref, w1_ref, w2_ref, bias_ref, recover_ref, code2_ref,
                    *, b1_off, b2_off, b3_off, br_off, c0, c1, D):
    # bf16 weights in VMEM; upcast once per grid step (tiny VPU cost), f32 acc.
    w1 = w1_ref[...].astype(jnp.float32)          # (c0, D)
    w2 = w2_ref[...].astype(jnp.float32)          # (c1, c0)
    x = x_ref[...]                                # (TM, D) f32

    # Static, lane-aligned slices of the packed bias buffer -> (1, n) views.
    b1 = bias_ref[:, b1_off:b1_off + c0]
    b2 = bias_ref[:, b2_off:b2_off + c1]
    b3 = bias_ref[:, b3_off:b3_off + c0]
    br = bias_ref[:, br_off:br_off + D]

    nt = (((1,), (1,)), ((), ()))                 # contract last dims: A @ B.T

    code1 = _sigmoid(lax.dot_general(x, w1, nt,
                                     preferred_element_type=jnp.float32) + b1)
    code2 = _sigmoid(lax.dot_general(code1, w2, nt,
                                     preferred_element_type=jnp.float32) + b2)
    code2_ref[...] = code2.astype(code2_ref.dtype)
    code3 = _sigmoid(jnp.dot(code2, w2,
                             preferred_element_type=jnp.float32) + b3)
    recover_ref[...] = (jnp.dot(code3, w1,
                                preferred_element_type=jnp.float32)
                        + br).astype(recover_ref.dtype)


def prepare_params(W1, b1, W2, b2, b3, b_r):
    """One-time parameter prep: bf16 weights + single packed bias buffer."""
    c0, D = W1.shape
    c1 = W2.shape[0]

    # Pack biases [b1 | b2 | b3 | b_r], each segment padded to a multiple of
    # 128 lanes so in-kernel slices stay lane-aligned.
    offsets = []
    pieces = []
    cur = 0
    for seg in (b1, b2, b3, b_r):
        n = seg.shape[0]
        pad = _round_up(n, 128)
        offsets.append(cur)
        pieces.append(jnp.pad(seg.astype(jnp.float32), (0, pad - n)))
        cur += pad
    bias_pack = jnp.concatenate(pieces).reshape(1, cur)

    return {
        "W1": W1.astype(jnp.bfloat16),   # (c0, D)
        "W2": W2.astype(jnp.bfloat16),   # (c1, c0)
        "bias": bias_pack,               # (1, sum of padded bias segments)
        "bias_offsets": tuple(offsets),
        "c0": c0, "c1": c1, "D": D,
    }


def _pick_batch_tile(B):
    # Largest tile (<=256, multiple of 8) that divides B; else one full block.
    for tm in (256, 128, 64, 32, 16, 8):
        if B % tm == 0:
            return tm
    return B


def cae2_forward(x, params):
    B, D = x.shape
    c0, c1 = params["c0"], params["c1"]
    assert D == params["D"]
    b1_off, b2_off, b3_off, br_off = params["bias_offsets"]
    bias = params["bias"]

    tm = _pick_batch_tile(B)
    grid = (B // tm,)

    kernel = functools.partial(
        cae2_fwd_kernel,
        b1_off=b1_off, b2_off=b2_off, b3_off=b3_off, br_off=br_off,
        c0=c0, c1=c1, D=D)

    recover, code2 = pl.pallas_call(
        kernel,
        out_shape=(jax.ShapeDtypeStruct((B, D), jnp.float32),
                   jax.ShapeDtypeStruct((B, c1), jnp.float32)),
        grid_spec=pltpu.PrefetchScalarGridSpec(
            num_scalar_prefetch=0,
            grid=grid,
            in_specs=[
                pl.BlockSpec((tm, D), lambda i: (i, 0)),              # x tile
                pl.BlockSpec((c0, D), lambda i: (0, 0)),              # W1 (bf16, resident)
                pl.BlockSpec((c1, c0), lambda i: (0, 0)),             # W2 (bf16, resident)
                pl.BlockSpec((1, bias.shape[1]), lambda i: (0, 0)),   # packed biases
            ],
            out_specs=(pl.BlockSpec((tm, D), lambda i: (i, 0)),       # recover tile
                       pl.BlockSpec((tm, c1), lambda i: (i, 0)))),    # code2 tile
        compiler_params=pltpu.CompilerParams(
            dimension_semantics=("parallel",)),
    )(x, params["W1"], params["W2"], bias)
    return recover, code2


if __name__ == "__main__":
    # Lane-dense shapes consistent with the module's forward; batch large
    # enough to exercise the batch grid (tm=256 -> grid of 2 tiles).
    B = 512                    # batch
    D = 256                    # dimensionality
    code_sizes = (128, 128)    # code_sizes[0], code_sizes[1]

    key = jax.random.PRNGKey(0)
    kx, kw1, kw2 = jax.random.split(key, 3)

    x = jax.random.normal(kx, (B, D), jnp.float32)
    # PyTorch inits W ~ N(0,1), biases = 0.1; scale W by 1/sqrt(fan_in) so the
    # sigmoids are not fully saturated and the numeric check is meaningful.
    W1 = jax.random.normal(kw1, (code_sizes[0], D), jnp.float32) / jnp.sqrt(D)
    W2 = (jax.random.normal(kw2, (code_sizes[1], code_sizes[0]), jnp.float32)
          / jnp.sqrt(code_sizes[0]))
    b1 = jnp.full((code_sizes[0],), 0.1, jnp.float32)
    b2 = jnp.full((code_sizes[1],), 0.1, jnp.float32)
    b3 = jnp.full((code_sizes[0],), 0.1, jnp.float32)
    b_r = jnp.full((D,), 0.1, jnp.float32)

    params = prepare_params(W1, b1, W2, b2, b3, b_r)

    recover, code2 = cae2_forward(x, params)
    recover, code2 = jax.block_until_ready((recover, code2))
    assert recover.shape == (B, D)
    assert code2.shape == (B, code_sizes[1])

    # Pure-JAX reference (mirrors the PyTorch forward) using the SAME
    # bf16-rounded weights the kernel consumes, so the only remaining
    # differences are default-precision matmul noise.
    W1r = params["W1"].astype(jnp.float32)
    W2r = params["W2"].astype(jnp.float32)
    c1_ref = jax.nn.sigmoid(x @ W1r.T + b1)
    c2_ref = jax.nn.sigmoid(c1_ref @ W2r.T + b2)
    c3_ref = jax.nn.sigmoid(c2_ref @ W2r + b3)
    rec_ref = c3_ref @ W1r + b_r
    assert jnp.allclose(code2, c2_ref, atol=2e-3, rtol=2e-3), "code2 mismatch"
    assert jnp.allclose(recover, rec_ref, atol=2e-3, rtol=2e-3), "recover mismatch"

    print("KERNEL_OK")
</pallas_src>

<mosaic_0001>
module attributes {stable_mosaic.version = 11 : i64} {
  func.func @cae2_fwd_kernel(%arg0: i32, %arg1: memref<256x256xf32, #tpu.memory_space<vmem>>, %arg2: memref<128x256xbf16, #tpu.memory_space<vmem>>, %arg3: memref<128x128xbf16, #tpu.memory_space<vmem>>, %arg4: memref<1x640xf32, #tpu.memory_space<vmem>>, %arg5: memref<256x256xf32, #tpu.memory_space<vmem>>, %arg6: memref<256x128xf32, #tpu.memory_space<vmem>>) attributes {dimension_semantics = [#tpu.dimension_semantics<parallel>], iteration_bounds = array<i64: 2>, scalar_prefetch = 0 : i64, scratch_operands = 0 : i64, tpu.core_type = #tpu.core_type<tc>, window_params = [{transform_indices = @transform_0, window_bounds = array<i64: 256, 256>}, {pipeline_mode = #tpu.pipeline_mode<synchronous>, transform_indices = @transform_1, window_bounds = array<i64: 128, 256>}, {pipeline_mode = #tpu.pipeline_mode<synchronous>, transform_indices = @transform_2, window_bounds = array<i64: 128, 128>}, {pipeline_mode = #tpu.pipeline_mode<synchronous>, transform_indices = @transform_3, window_bounds = array<i64: 1, 640>}, {transform_indices = @transform_4, window_bounds = array<i64: 256, 256>}, {transform_indices = @transform_5, window_bounds = array<i64: 256, 128>}]} {
    %c0 = arith.constant 0 : index
    %c0_0 = arith.constant 0 : index
    %0 = vector.load %arg2[%c0, %c0_0] : memref<128x256xbf16, #tpu.memory_space<vmem>>, vector<128x256xbf16>
    %1 = arith.extf %0 : vector<128x256xbf16> to vector<128x256xf32>
    %c0_1 = arith.constant 0 : index
    %c0_2 = arith.constant 0 : index
    %2 = vector.load %arg3[%c0_1, %c0_2] : memref<128x128xbf16, #tpu.memory_space<vmem>>, vector<128x128xbf16>
    %3 = arith.extf %2 : vector<128x128xbf16> to vector<128x128xf32>
    %c0_3 = arith.constant 0 : index
    %c0_4 = arith.constant 0 : index
    %4 = vector.load %arg1[%c0_3, %c0_4] : memref<256x256xf32, #tpu.memory_space<vmem>>, vector<256x256xf32>
    %c0_5 = arith.constant 0 : index
    %c0_6 = arith.constant 0 : index
    %5 = vector.load %arg4[%c0_5, %c0_6] : memref<1x640xf32, #tpu.memory_space<vmem>>, vector<1x128xf32>
    %c0_7 = arith.constant 0 : index
    %c128 = arith.constant 128 : index
    %6 = vector.load %arg4[%c0_7, %c128] : memref<1x640xf32, #tpu.memory_space<vmem>>, vector<1x128xf32>
    %c0_8 = arith.constant 0 : index
    %c256 = arith.constant 256 : index
    %7 = vector.load %arg4[%c0_8, %c256] : memref<1x640xf32, #tpu.memory_space<vmem>>, vector<1x128xf32>
    %c0_9 = arith.constant 0 : index
    %c384 = arith.constant 384 : index
    %8 = vector.load %arg4[%c0_9, %c384] : memref<1x640xf32, #tpu.memory_space<vmem>>, vector<1x256xf32>
    %cst = arith.constant dense<0.000000e+00> : vector<256x128xf32>
    %9 = tpu.matmul %4, %1, %cst {dimension_numbers = #tpu.dot_dimension_numbers<[1], [1], [0], [0], [0, 0, 1, 0], [], []>} : vector<256x256xf32>, vector<128x256xf32>, vector<256x128xf32> -> vector<256x128xf32>
    %10 = vector.broadcast %5 : vector<1x128xf32> to vector<256x128xf32>
    %11 = arith.addf %9, %10 : vector<256x128xf32>
    %cst_10 = arith.constant 5.000000e-01 : f32
    %12 = vector.broadcast %cst_10 : f32 to vector<256x128xf32>
    %13 = arith.mulf %12, %11 : vector<256x128xf32>
    %14 = math.tanh %13 : vector<256x128xf32>
    %cst_11 = arith.constant 5.000000e-01 : f32
    %15 = vector.broadcast %cst_11 : f32 to vector<256x128xf32>
    %16 = arith.mulf %15, %14 : vector<256x128xf32>
    %cst_12 = arith.constant 5.000000e-01 : f32
    %17 = vector.broadcast %cst_12 : f32 to vector<256x128xf32>
    %18 = arith.addf %16, %17 : vector<256x128xf32>
    %cst_13 = arith.constant dense<0.000000e+00> : vector<256x128xf32>
    %19 = tpu.matmul %18, %3, %cst_13 {dimension_numbers = #tpu.dot_dimension_numbers<[1], [1], [0], [0], [0, 0, 1, 0], [], []>} : vector<256x128xf32>, vector<128x128xf32>, vector<256x128xf32> -> vector<256x128xf32>
    %20 = vector.broadcast %6 : vector<1x128xf32> to vector<256x128xf32>
    %21 = arith.addf %19, %20 : vector<256x128xf32>
    %cst_14 = arith.constant 5.000000e-01 : f32
    %22 = vector.broadcast %cst_14 : f32 to vector<256x128xf32>
    %23 = arith.mulf %22, %21 : vector<256x128xf32>
    %24 = math.tanh %23 : vector<256x128xf32>
    %cst_15 = arith.constant 5.000000e-01 : f32
    %25 = vector.broadcast %cst_15 : f32 to vector<256x128xf32>
    %26 = arith.mulf %25, %24 : vector<256x128xf32>
    %cst_16 = arith.constant 5.000000e-01 : f32
    %27 = vector.broadcast %cst_16 : f32 to vector<256x128xf32>
    %28 = arith.addf %26, %27 : vector<256x128xf32>
    %c0_17 = arith.constant 0 : index
    %c0_18 = arith.constant 0 : index
    %29 = vector.load %arg6[%c0_17, %c0_18] : memref<256x128xf32, #tpu.memory_space<vmem>>, vector<256x128xf32>
    tpu.vector_store %arg6[%c0_17, %c0_18], %28 {strides = array<i32>} : memref<256x128xf32, #tpu.memory_space<vmem>>, vector<256x128xf32>,
    %cst_19 = arith.constant dense<0.000000e+00> : vector<256x128xf32>
    %30 = tpu.matmul %28, %3, %cst_19 {dimension_numbers = #tpu.dot_dimension_numbers<[1], [0], [0], [1], [0, 0, 1, 1], [], []>} : vector<256x128xf32>, vector<128x128xf32>, vector<256x128xf32> -> vector<256x128xf32>
    %31 = vector.broadcast %7 : vector<1x128xf32> to vector<256x128xf32>
    %32 = arith.addf %30, %31 : vector<256x128xf32>
    %cst_20 = arith.constant 5.000000e-01 : f32
    %33 = vector.broadcast %cst_20 : f32 to vector<256x128xf32>
    %34 = arith.mulf %33, %32 : vector<256x128xf32>
    %35 = math.tanh %34 : vector<256x128xf32>
    %cst_21 = arith.constant 5.000000e-01 : f32
    %36 = vector.broadcast %cst_21 : f32 to vector<256x128xf32>
    %37 = arith.mulf %36, %35 : vector<256x128xf32>
    %cst_22 = arith.constant 5.000000e-01 : f32
    %38 = vector.broadcast %cst_22 : f32 to vector<256x128xf32>
    %39 = arith.addf %37, %38 : vector<256x128xf32>
    %cst_23 = arith.constant dense<0.000000e+00> : vector<256x256xf32>
    %40 = tpu.matmul %39, %1, %cst_23 {dimension_numbers = #tpu.dot_dimension_numbers<[1], [0], [0], [1], [0, 0, 1, 1], [], []>} : vector<256x128xf32>, vector<128x256xf32>, vector<256x256xf32> -> vector<256x256xf32>
    %41 = vector.broadcast %8 : vector<1x256xf32> to vector<256x256xf32>
    %42 = arith.addf %40, %41 : vector<256x256xf32>
    %c0_24 = arith.constant 0 : index
    %c0_25 = arith.constant 0 : index
    %43 = vector.load %arg5[%c0_24, %c0_25] : memref<256x256xf32, #tpu.memory_space<vmem>>, vector<256x256xf32>
    tpu.vector_store %arg5[%c0_24, %c0_25], %42 {strides = array<i32>} : memref<256x256xf32, #tpu.memory_space<vmem>>, vector<256x256xf32>,
    return
  }
  func.func @transform_0(%arg0: i32) -> (i32, i32) {
    %c0_i32 = arith.constant 0 : i32
    %c0_i32_0 = arith.constant 0 : i32
    return %arg0, %c0_i32 : i32, i32
  }
  func.func @transform_1(%arg0: i32) -> (i32, i32) {
    %c0_i32 = arith.constant 0 : i32
    %c0_i32_0 = arith.constant 0 : i32
    %c0_i32_1 = arith.constant 0 : i32
    return %c0_i32, %c0_i32_0 : i32, i32
  }
  func.func @transform_2(%arg0: i32) -> (i32, i32) {
    %c0_i32 = arith.constant 0 : i32
    %c0_i32_0 = arith.constant 0 : i32
    %c0_i32_1 = arith.constant 0 : i32
    return %c0_i32, %c0_i32_0 : i32, i32
  }
  func.func @transform_3(%arg0: i32) -> (i32, i32) {
    %c0_i32 = arith.constant 0 : i32
    %c0_i32_0 = arith.constant 0 : i32
    %c0_i32_1 = arith.constant 0 : i32
    return %c0_i32, %c0_i32_0 : i32, i32
  }
  func.func @transform_4(%arg0: i32) -> (i32, i32) {
    %c0_i32 = arith.constant 0 : i32
    %c0_i32_0 = arith.constant 0 : i32
    return %arg0, %c0_i32 : i32, i32
  }
  func.func @transform_5(%arg0: i32) -> (i32, i32) {
    %c0_i32 = arith.constant 0 : i32
    %c0_i32_0 = arith.constant 0 : i32
    return %arg0, %c0_i32 : i32, i32
  }
}

</mosaic_0001>

<bundles_post_ra>
// kernel: tpu_custom_call.1
= control target key start
LH: loop header
LB: loop body
LE: loop exit
PB: predicated region body
PF: predicated region fallthrough
CT: control target
= control target key end

     0   :  { %11 = vsyncpa [#allocation3], 0  ;;  %s3898_s0 = inlined_call_operand.hbm [shape: f32[512,256], index: 0, kind: input, shape index: {}]   ;;  %s3899_s1 = inlined_call_operand.hbm [shape: bf16[128,256], index: 1, kind: input, shape index: {}]   ;;  %s3900_s2 = inlined_call_operand.hbm [shape: bf16[128,128], index: 2, kind: input, shape index: {}]   ;;  %s3901_s3 = inlined_call_operand.vmem [shape: f32[1,640], index: 3, kind: input, shape index: {}]   ;;  %s3902_s4 = inlined_call_operand.hbm [shape: f32[512,256], index: 4, kind: output, shape index: {0}]   ;;  %s3903_s5 = inlined_call_operand.hbm [shape: f32[512,128], index: 5, kind: output, shape index: {1}]  }
   0x1   :  { %13 = vsyncpa [#allocation3 + $0x1], 0 }
   0x2   :  { %14 = vsyncpa [#allocation6], 0 }
   0x3   :  { %15 = vsyncpa [#allocation4], 0 }
   0x4   :  { %17 = vsyncpa [#allocation4 + $0x1], 0 }
   0x5   :  { %18 = vsyncpa [#allocation10], 0 }
   0x6   :  { %20 = vsyncpa [#allocation10 + $0x1], 0  ;;  %s3074_s18 = smov 0   ;;  %s3076_s19 = smov 0  }
   0x7   :  { %s3078_s20 = smov 0   ;;  %s3080_s21 = smov 0  }
   0x8 LB: > { %s3095_s22 = sadd.s32 4294967295, %s3026_s21   ;;  %s2036_s23 = sadd.s32 4294967294, %s3026_s21   ;;  %s3026_s21 = sphi %s3080_s21, %s3923_s21   ;;  %s3022_s20 = sphi %s3078_s20, %s3922_s20   ;;  %s3018_s19 = sphi %s3076_s19, %s3921_s19   ;;  %s3014_s18 = sphi %s3074_s18, %s3920_s18  }
   0x9   : > { %p46_p0 = scmp.ne.s32.totalorder %s3018_s19, %s3014_s18  ;;  %p3904_p1 = scmp.eq.s32.totalorder %s3095_s22, 0 }
   0xa   : > { %p139_p3 = scmp.eq.s32.totalorder %s2036_s23, 1  ;;  %p2037_p5 = scmp.ge.s32.totalorder %s3026_s21, 1 }
   0xb   : > { %p3104_p4 = por %p3904_p1, %p46_p0  ;;  %p172_p7 = scmp.lt.s32.totalorder %s3026_s21, 3 }
   0xc   : > { %p3109_p6 = por %p139_p3, %p46_p0  ;;  %s3028_s27 = smov [#allocation5]  }
   0xd   : > { %s3907_s24 = scalar_select %p3104_p4, 1, 0 }
   0xe   : > { %s3908_s25 = scalar_select %p3109_p6, 1, 0 }
   0xf   : > { %p3114_p8 = pnand %p2037_p5, %p172_p7  ;;  %s184_s28 = sshll.u32 %s3028_s27, 4  ;;  %s3118_s28 = int_to_ptr.vmem [resolvable:$true] %s184_s28 }
  0x10   : > { %s3029_s30 = smov [#allocation7]   ;;  %s2838_s9 = scalar_lea.hbm %s3899_s1, 2048 }
  0x11   : > { %p2553_p9 = pneg %p3114_p8  ;;  %s197_s6 = sshll.u32 %s3029_s30, 4  ;;  %s3129_s6 = int_to_ptr.vmem [resolvable:$true] %s197_s6 }
  0x12   : > { %p2839_p12 = scmp.ne.s32.totalorder %s3899_s1, %s2838_s9  ;;  %p2845_p5 = scmp.lt.u32.totalorder %s2838_s9, %s3899_s1 }
  0x13   : > { %p3125_p11 = pnand %p2553_p9, %p3904_p1 }
  0x15   : > { %p2840_p13 = pneg %p3125_p11 }
  0x17   : > { %p2841_p0 = pnand %p2840_p13, %p2839_p12 }
  0x19   : > { %p2842_p3 = pneg %p2841_p0 }
  0x1b   : > { %p2847_p7 = pnand %p2845_p5, %p2842_p3 }
  0x1d   : > { %2850 = shalt.err (!%p2847_p7)
}
  0x1e   : > { %s2851_s14 = scalar_lea.vmem %s3118_s28, 2048  ;;  %p2859_p2 = scmp.lt.s32.totalorder %s3118_s28, %s3118_s28 }
  0x1f   : > { %p2852_p9 = scmp.ne.s32.totalorder %s3118_s28, %s2851_s14  ;;  %p2860_p12 = scmp.lt.s32.totalorder %s2851_s14, %s2851_s14 }
  0x21   : > { %p2854_p10 = pnand %p2852_p9, %p2840_p13  ;;  %p2861_p0 = por %p2860_p12, %p2859_p2 }
  0x23   : > { %p2855_p1 = pneg %p2854_p10 }
  0x25   : > { %p2862_p6 = pnand %p2861_p0, %p2855_p1 }
  0x27   : > { %2865 = shalt.err (!%p2862_p6)
}
  0x28   : > { %s3030_s15 = smov 128   ;;  %s3031_s16 = smov 8  }
  0x29   : > { %2556 = dma.hbm_to_vmem [thread:$0]  (!%p3125_p11), %s3899_s1, 2048, %s3118_s28, [#allocation6], %s3030_s15, %s3030_s15, %s3031_s16  }
  0x2a   : > { %s2866_s7 = scalar_lea.hbm %s3900_s2, 1024 }
  0x2b   : > { %p2867_p2 = scmp.ne.s32.totalorder %s3900_s2, %s2866_s7  ;;  %p2873_p10 = scmp.lt.u32.totalorder %s2866_s7, %s3900_s2 }
  0x2d   : > { %p2869_p1 = pnand %p2867_p2, %p2840_p13 }
  0x2f   : > { %p2870_p6 = pneg %p2869_p1 }
  0x31   : > { %p2875_p3 = pnand %p2873_p10, %p2870_p6 }
  0x33   : > { %2878 = shalt.err (!%p2875_p3)
}
  0x34   : > { %s2879_s28 = scalar_lea.vmem %s3129_s6, 1024  ;;  %p2887_p12 = scmp.lt.s32.totalorder %s3129_s6, %s3129_s6 }
  0x35   : > { %p2880_p5 = scmp.ne.s32.totalorder %s3129_s6, %s2879_s28  ;;  %p2888_p0 = scmp.lt.s32.totalorder %s2879_s28, %s2879_s28 }
  0x37   : > { %p2882_p7 = pnand %p2880_p5, %p2840_p13  ;;  %p2889_p2 = por %p2888_p0, %p2887_p12 }
  0x39   : > { %p2883_p9 = pneg %p2882_p7 }
  0x3b   : > { %p2890_p1 = pnand %p2889_p2, %p2883_p9 }
  0x3d   : > { %2893 = shalt.err (!%p2890_p1)
}
  0x3e   : > { %s3032_s12 = smov 64   ;;  %s3033_s13 = smov 4  }
  0x3f   : > { %2559 = dma.hbm_to_vmem [thread:$0]  (!%p3125_p11), %s3900_s2, 1024, %s3129_s6, [#allocation6], %s3032_s12, %s3032_s12, %s3033_s13  }
  0x40   : > { %s3184_s16 = sadd.s32 1, %s3026_s21   ;;  %s33_s23 = sadd.s32 1, %s3022_s20 }
  0x41   : > { %s30_s17 = ssub.s32 %s3026_s21, %s3184_s16  ;;  %p40_p6 = scmp.ne.s32.totalorder %s3022_s20, %s3018_s19 }
  0x42   : > { %p31_p13 = scmp.eq.s32.totalorder %s30_s17, 0  ;;  %p41_p10 = scmp.eq.s32.totalorder %s3026_s21, 0 }
  0x43   : > { %p3911_p5 = scmp.eq.s32.totalorder %s3095_s22, 1  ;;  %p2573_p9 = scmp.lt.s32.totalorder %s3026_s21, 2 }
  0x44   : > { %s3193_s27 = scalar_select %p31_p13, %s3022_s20, %s33_s23  }
  0x45   : > { %p42_p3 = por %p41_p10, %p40_p6  ;;  %p3197_p7 = por %p3911_p5, %p40_p6 }
  0x46   : > { %s214_s29 = sand.u32 1, %s3022_s20   ;;  %s2064_s6 = sshll.u32 %s3026_s21, 13 }
  0x47   : > { %s3912_s30 = scalar_select %p3197_p7, 1, 0 }
  0x48   : > { %s2041_s7 = sshll.u32 %s214_s29, 9  ;;  %s3207_s10 = scalar_lea.hbm %s3898_s0, %s2064_s6 }
  0x49   : > { %s218_s11 = scalar_lea.vmem [#allocation2], %s2041_s7  ;;  %p3211_p11 = pnand %p2573_p9, %p42_p3 }
  0x4a   : > { %s226_s28 = sshll.u32 %s218_s11, 4  ;;  %s3215_s13 = scalar_lea.sflag [#allocation3], %s214_s29  ;;  %s3209_s28 = int_to_ptr.vmem [resolvable:$true] %s226_s28 }
  0x4b   : > { %s2894_s14 = scalar_lea.hbm %s3207_s10, 8192  ;;  %p2896_p0 = pneg %p3211_p11 }
  0x4c   : > { %p2895_p12 = scmp.ne.s32.totalorder %s3207_s10, %s2894_s14  ;;  %s2899_s23 = scalar_lea.hbm %s3898_s0, 16384 }
  0x4d   : > { %p2900_p13 = scmp.lt.u32.totalorder %s3207_s10, %s3898_s0  ;;  %p2901_p6 = scmp.lt.u32.totalorder %s2899_s23, %s2894_s14 }
  0x4e   : > { %p2897_p2 = pnand %p2896_p0, %p2895_p12  ;;  %p2903_p3 = scmp.lt.u32.totalorder %s2894_s14, %s3207_s10 }
  0x4f   : > { %p2902_p10 = por %p2901_p6, %p2900_p13 }
  0x50   : > { %p2898_p1 = pneg %p2897_p2 }
  0x51   : > { %p2904_p5 = por %p2903_p3, %p2902_p10 }
  0x53   : > { %p2905_p9 = pnand %p2904_p5, %p2898_p1 }
  0x55   : > { %2908 = shalt.err (!%p2905_p9)
}
  0x56   : > { %s2909_s29 = scalar_lea.vmem %s3209_s28, 8192  ;;  %s3034_s8 = smov [#allocation2]  }
  0x57   : > { %p2910_p12 = scmp.ne.s32.totalorder %s3209_s28, %s2909_s29  ;;  %s2914_s9 = sshll.u32 %s3034_s8, 4  ;;  %s2915_s9 = int_to_ptr.vmem [resolvable:$false] %s2914_s9 }
  0x58   : > { %s2916_s11 = scalar_lea.vmem %s2915_s9, 16384  ;;  %p2917_p4 = scmp.lt.s32.totalorder %s3209_s28, %s2915_s9 }
  0x59   : > { %p2912_p2 = pnand %p2910_p12, %p2896_p0  ;;  %p2918_p13 = scmp.lt.s32.totalorder %s2916_s11, %s2909_s29 }
  0x5b   : > { %p2913_p7 = pneg %p2912_p2  ;;  %p2919_p6 = por %p2918_p13, %p2917_p4 }
  0x5d   : > { %p2920_p10 = pnand %p2919_p6, %p2913_p7 }
  0x5f   : > { %2923 = shalt.err (!%p2920_p10)
}
  0x60   : > { %s3035_s14 = smov 256   ;;  %s3036_s15 = smov 16  }
  0x61   : > { %2563 = dma.hbm_to_vmem [thread:$0]  (!%p3211_p11), %s3207_s10, 8192, %s3209_s28, %s3215_s13, %s3035_s14, %s3035_s14, %s3036_s15  }
  0x62   : > { %238 = sbr.rel (%p3114_p8) target bundleno = 1228 (0x4cc), region = 36  ;;  %s3246_s17 = sand.u32 (!%p3114_p8), 1, %s3018_s19  }
  0x63   : > { %s2046_s23 = sshll.u32 (!%p3114_p8), %s3246_s17, 9  ;;  %s241_s7 = scalar_lea.sflag (!%p3114_p8), [#allocation3], %s3246_s17 }
  0x64   : > { %s3252_s6 = scalar_lea.vmem (!%p3114_p8), [#allocation2], %s2046_s23  ;;  %p3914_p4 = scmp.ne.s32.totalorder (!%p3114_p8), %s3907_s24, 0 }
  0x69   : > { %2997 = dma.done.wait (%p3914_p4), %s241_s7, 8192  }
  0x6a   : > { %2999 = vsyncadd (%p3914_p4), %s241_s7, 4294959104  ;;  %p3915_p7 = scmp.eq.s32.totalorder %s3095_s22, 0 }
  0x6c   : > { %3001 = dma.done.wait (%p3915_p7), [#allocation6], 3072   ;;  %p3916_p8 = pmov %p3915_p7 }
  0x6d   : > { %v2622_v0 = vld [vmem:[#allocation5 + $0x4] ss:$8 sps:$4 sm:$0xff]   ;;  %v3262_v1 = vld [vmem:[#allocation5] ss:$8 sps:$4 sm:$0xff]   ;;  %v3264_v2 = vld [vmem:[#allocation5 + $0x14] ss:$8 sps:$4 sm:$0xff]  }
  0x6e   : > { %3003 = vsyncadd (%p3916_p8), [#allocation6], 4294964224  ;;  %2364 = vmatprep.subr.bf16.mxu0 %v2622_v0  ;;  %2491 = vmatprep.subr.bf16.mxu1 %v2622_v0  ;;  %v3270_v3 = vld [vmem:[#allocation5 + $0x10] ss:$8 sps:$4 sm:$0xff]   ;;  %v3272_v4 = vld [vmem:[#allocation5 + $0x24] ss:$8 sps:$4 sm:$0xff]  }
  0x6f   : > { %2366 = vmatpush1.bf16.xpose.msra.mxu0 %v3262_v1  ;;  %2499 = vmatpush1.bf16.xpose.msra.mxu1 %v3262_v1  ;;  %v368_v5 = vld [vmem:[%s3252_s6 + $0x8] sm:$0xff]  ;;  %v3281_v7 = vld [vmem:[#allocation5 + $0x34] ss:$8 sps:$4 sm:$0xff]   ;;  %v3288_v9 = vld [vmem:[#allocation5 + $0x30] ss:$8 sps:$4 sm:$0xff]   ;;  %s2050_s12 = sshll.u32 %s3246_s17, 8 }
  0x70   : > { %2368 = vmatprep.subr.bf16.mxu0 %v3264_v2  ;;  %2492 = vmatprep.subr.bf16.mxu1 %v3264_v2  ;;  %v3279_v6 = vld [vmem:[#allocation5 + $0x20] ss:$8 sps:$4 sm:$0xff]   ;;  %v3290_v10 = vld [vmem:[#allocation5 + $0x44] ss:$8 sps:$4 sm:$0xff]   ;;  %v3298_v12 = vld [vmem:[#allocation5 + $0x54] ss:$8 sps:$4 sm:$0xff]  }
  0x71   : > { %505 = vmatprep.mubr.f32.mxu0 %v368_v5  ;;  %v400_v8 = vld [vmem:[%s3252_s6 + $0x108] sm:$0xff]  ;;  %v3304_v13 = vld [vmem:[#allocation5 + $0x50] ss:$8 sps:$4 sm:$0xff]   ;;  %v3314_v16 = vld [vmem:[#allocation5 + $0x74] ss:$8 sps:$4 sm:$0xff]   ;;  %s3546_s13 = scalar_lea.vmem [#allocation9], %s2050_s12 }
  0x72   : > { %585 = vmatprep.mubr.f32.mxu1 %v400_v8  ;;  %v3296_v11 = vld [vmem:[#allocation5 + $0x40] ss:$8 sps:$4 sm:$0xff]   ;;  %v3306_v14 = vld [vmem:[#allocation5 + $0x64] ss:$8 sps:$4 sm:$0xff]   ;;  %v3320_v17 = vld [vmem:[#allocation5 + $0x70] ss:$8 sps:$4 sm:$0xff]  }
  0x73   : > { %v3312_v15 = vld [vmem:[#allocation5 + $0x60] ss:$8 sps:$4 sm:$0xff]   ;;  %v370_v20 = vld [vmem:[%s3252_s6 + $0x18] sm:$0xff]  ;;  %v369_v24 = vld [vmem:[%s3252_s6 + $0x10] sm:$0xff]  ;;  %s3686_s14 = scalar_lea.vmem [#allocation8], %s2046_s23  ;;  %s2067_s15 = sshll.u32 %s3095_s22, 12 }
  0x74   : > { %v3322_v18 = vld [vmem:[#allocation7] sm:$0xff]   ;;  %v402_v22 = vld [vmem:[%s3252_s6 + $0x118] sm:$0xff]  ;;  %v3331_v23 = vld [vmem:[#allocation7 + $0x8] sm:$0xff]   ;;  %s1912_s7 = sshll.u32 %s3546_s13, 4  ;;  %s3695_s26 = scalar_lea.hbm %s3903_s5, %s2067_s15  ;;  %s3697_s7 = int_to_ptr.vmem [resolvable:$true] %s1912_s7 }
  0x75   : > { %v367_v19 = vld [vmem:[%s3252_s6] sm:$0xff]  ;;  %v372_v25 = vld [vmem:[%s3252_s6 + $0x28] sm:$0xff]  ;;  %v401_v26 = vld [vmem:[%s3252_s6 + $0x110] sm:$0xff]  ;;  %s1882_s23 = scalar_lea.sflag [#allocation10], %s3246_s17  ;;  %s2924_s10 = scalar_lea.vmem %s3697_s7, 4096 }
  0x76   : > { %v399_v21 = vld [vmem:[%s3252_s6 + $0x100] sm:$0xff]  ;;  %v404_v27 = vld [vmem:[%s3252_s6 + $0x128] sm:$0xff]  ;;  %v374_v29 = vld [vmem:[%s3252_s6 + $0x38] sm:$0xff]  ;;  %p2925_p11 = scmp.ne.s32.totalorder %s3697_s7, %s2924_s10  ;;  %p3917_p0 = scmp.ne.s32.totalorder %s3912_s30, 0 }
  0x77   : > { %2370 = vmatpush1.bf16.xpose.msra.mxu0 %v3270_v3  ;;  %2500 = vmatpush1.bf16.xpose.msra.mxu1 %v3270_v3  ;;  %v371_v28 = vld [vmem:[%s3252_s6 + $0x20] sm:$0xff]  ;;  %v406_v31 = vld [vmem:[%s3252_s6 + $0x138] sm:$0xff]  ;;  %v3346_v32 = vld [vmem:[#allocation7 + $0x10] sm:$0xff]   ;;  %s3038_s28 = smov [#allocation9]  }
  0x78   : > { %2372 = vmatprep.subr.bf16.mxu0 %v3272_v4  ;;  %2493 = vmatprep.subr.bf16.mxu1 %v3272_v4  ;;  %v403_v30 = vld [vmem:[%s3252_s6 + $0x120] sm:$0xff]  ;;  %v373_v33 = vld [vmem:[%s3252_s6 + $0x30] sm:$0xff]  ;;  %v376_v34 = vld [vmem:[%s3252_s6 + $0x48] sm:$0xff]  ;;  %p2926_p1 = pnand %p2925_p11, %p3917_p0  ;;  %s2928_s12 = sshll.u32 %s3038_s28, 4  ;;  %s2929_s12 = int_to_ptr.vmem [resolvable:$false] %s2928_s12 }
  0x79   : > { %v405_v35 = vld [vmem:[%s3252_s6 + $0x130] sm:$0xff]  ;;  %v408_v36 = vld [vmem:[%s3252_s6 + $0x148] sm:$0xff]  ;;  %v375_v37 = vld [vmem:[%s3252_s6 + $0x40] sm:$0xff]  ;;  %p2931_p5 = scmp.lt.s32.totalorder %s3697_s7, %s2929_s12 }
  0x7a   : > { %v378_v38 = vld [vmem:[%s3252_s6 + $0x58] sm:$0xff]  ;;  %v407_v39 = vld [vmem:[%s3252_s6 + $0x140] sm:$0xff]  ;;  %v377_v42 = vld [vmem:[%s3252_s6 + $0x50] sm:$0xff]  ;;  %p2927_p3 = pneg %p2926_p1 }
  0x7b   : > { %v410_v40 = vld [vmem:[%s3252_s6 + $0x158] sm:$0xff]  ;;  %v380_v43 = vld [vmem:[%s3252_s6 + $0x68] sm:$0xff]  ;;  %v409_v44 = vld [vmem:[%s3252_s6 + $0x150] sm:$0xff] }
  0x7c   : > { %v3362_v41 = vld [vmem:[#allocation7 + $0x18] sm:$0xff]   ;;  %v412_v45 = vld [vmem:[%s3252_s6 + $0x168] sm:$0xff]  ;;  %v379_v46 = vld [vmem:[%s3252_s6 + $0x60] sm:$0xff] }
  0x7d   : > { %v382_v47 = vld [vmem:[%s3252_s6 + $0x78] sm:$0xff]  ;;  %v411_v48 = vld [vmem:[%s3252_s6 + $0x160] sm:$0xff]  ;;  %v381_v51 = vld [vmem:[%s3252_s6 + $0x70] sm:$0xff] }
  0x7e   : > { %v414_v49 = vld [vmem:[%s3252_s6 + $0x178] sm:$0xff]  ;;  %v3378_v50 = vld [vmem:[#allocation7 + $0x20] sm:$0xff]   ;;  %v384_v52 = vld [vmem:[%s3252_s6 + $0x88] sm:$0xff] }
  0x7f   : > { %2374 = vmatpush1.bf16.xpose.msra.mxu0 %v3279_v6  ;;  %2501 = vmatpush1.bf16.xpose.msra.mxu1 %v3279_v6  ;;  %v413_v53 = vld [vmem:[%s3252_s6 + $0x170] sm:$0xff]  ;;  %v416_v54 = vld [vmem:[%s3252_s6 + $0x188] sm:$0xff]  ;;  %v383_v55 = vld [vmem:[%s3252_s6 + $0x80] sm:$0xff] }
  0x80   : > { %2376 = vmatprep.subr.bf16.mxu0 %v3281_v7  ;;  %2494 = vmatprep.subr.bf16.mxu1 %v3281_v7  ;;  %v386_v56 = vld [vmem:[%s3252_s6 + $0x98] sm:$0xff]  ;;  %v415_v57 = vld [vmem:[%s3252_s6 + $0x180] sm:$0xff]  ;;  %v3394_v59 = vld [vmem:[#allocation7 + $0x28] sm:$0xff]  }
  0x81   : > { %v418_v58 = vld [vmem:[%s3252_s6 + $0x198] sm:$0xff]  ;;  %v385_v60 = vld [vmem:[%s3252_s6 + $0x90] sm:$0xff]  ;;  %v388_v61 = vld [vmem:[%s3252_s6 + $0xa8] sm:$0xff] }
  0x82   : > { %v417_v62 = vld [vmem:[%s3252_s6 + $0x190] sm:$0xff]  ;;  %v420_v63 = vld [vmem:[%s3252_s6 + $0x1a8] sm:$0xff]  ;;  %v391_v8 = vld [vmem:[%s3252_s6 + $0xc0] sm:$0xff] }
  0x83   : > { %v392_v5 = vld [vmem:[%s3252_s6 + $0xc8] sm:$0xff] }
  0x87   : > { %2378 = vmatpush1.bf16.xpose.msra.mxu0 %v3288_v9  ;;  %2502 = vmatpush1.bf16.xpose.msra.mxu1 %v3288_v9 }
  0x88   : > { %2380 = vmatprep.subr.bf16.mxu0 %v3290_v10  ;;  %2495 = vmatprep.subr.bf16.mxu1 %v3290_v10 }
  0x8f   : > { %2382 = vmatpush1.bf16.xpose.msra.mxu0 %v3296_v11  ;;  %2503 = vmatpush1.bf16.xpose.msra.mxu1 %v3296_v11 }
  0x90   : > { %2384 = vmatprep.subr.bf16.mxu0 %v3298_v12  ;;  %2496 = vmatprep.subr.bf16.mxu1 %v3298_v12 }
  0x97   : > { %2386 = vmatpush1.bf16.xpose.msra.mxu0 %v3304_v13  ;;  %2504 = vmatpush1.bf16.xpose.msra.mxu1 %v3304_v13 }
  0x98   : > { %2388 = vmatprep.subr.bf16.mxu0 %v3306_v14  ;;  %2497 = vmatprep.subr.bf16.mxu1 %v3306_v14 }
  0x9f   : > { %2390 = vmatpush1.bf16.xpose.msra.mxu0 %v3312_v15  ;;  %2505 = vmatpush1.bf16.xpose.msra.mxu1 %v3312_v15 }
  0xa0   : > { %2392 = vmatprep.subr.bf16.mxu0 %v3314_v16  ;;  %2498 = vmatprep.subr.bf16.mxu1 %v3314_v16 }
  0xa7   : > { %2394 = vmatpush1.bf16.xpose.msra.mxu0 %v3320_v17  ;;  %2506 = vmatpush1.bf16.xpose.msra.mxu1 %v3320_v17 }
  0xa8   : > { %2460 = vmatprep.subr.bf16.mxu0 %v2622_v0  ;;  %2396 = vmatprep.subr.bf16.mxu1 %v3322_v18  ;;  %v387_v0 = vld [vmem:[%s3252_s6 + $0xa0] sm:$0xff] }
  0xae   : > { %506 = vmatmul.mubr.f32.vlgmr.msra.gmra.mrb[0].mxu0 %v367_v19  ;;  %586 = vmatmul.mubr.f32.vlgmr.msra.gmra.mrb[0].mxu1 %v399_v21  ;;  %v427_v19 = vld [vmem:[%s3252_s6 + $0x1e0] sm:$0xff]  ;;  %v397_v21 = vld [vmem:[%s3252_s6 + $0xf0] sm:$0xff] }
  0xaf   : > { %510 = vmatprep.mubr.f32.mxu0 %v370_v20  ;;  %590 = vmatprep.mubr.f32.mxu1 %v402_v22  ;;  %v430_v20 = vld [vmem:[%s3252_s6 + $0x1f8] sm:$0xff]  ;;  %v429_v22 = vld [vmem:[%s3252_s6 + $0x1f0] sm:$0xff] }
  0xb0   : > { %2398 = vmatpush3.bf16.xpose.msra.mxu1 %v3322_v18  ;;  %2462 = vmatpush1.bf16.msra.mxu0 %v3262_v1  ;;  %v390_v1 = vld [vmem:[%s3252_s6 + $0xb8] sm:$0xff] }
  0xb1   : > { %2400 = vmatprep.subr.bf16.mxu1 %v3331_v23  ;;  %2464 = vmatprep.subr.bf16.mxu0 %v3264_v2  ;;  %v419_v2 = vld [vmem:[%s3252_s6 + $0x1a0] sm:$0xff] }
  0xb2   : > { %511 = vmatmul.mubr.f32.gmra.mrb[2].mxu0 %v369_v24  ;;  %591 = vmatmul.mubr.f32.gmra.mrb[2].mxu1 %v401_v26  ;;  %v3425_v24 = vld [vmem:[#allocation7 + $0x30] sm:$0xff]   ;;  %v3437_v26 = vld [vmem:[%s3901_s3] ss:$0 sm:$0xff] }
  0xb3   : > { %515 = vmatprep.mubr.f32.mxu0 %v372_v25  ;;  %595 = vmatprep.mubr.f32.mxu1 %v404_v27  ;;  %v3429_v25 = vld [vmem:[#allocation7 + $0x38] sm:$0xff]  }
  0xb4   : > { %2466 = vmatpush1.bf16.msra.mxu0 %v3270_v3  ;;  %v422_v3 = vld [vmem:[%s3252_s6 + $0x1b8] sm:$0xff] }
  0xb5   : > { %2468 = vmatprep.subr.bf16.mxu0 %v3272_v4  ;;  %v389_v4 = vld [vmem:[%s3252_s6 + $0xb0] sm:$0xff] }
  0xb6   : > { %516 = vmatmul.mubr.f32.gmra.mrb[4].mxu0 %v371_v28  ;;  %596 = vmatmul.mubr.f32.gmra.mrb[4].mxu1 %v403_v30 }
  0xb7   : > { %520 = vmatprep.mubr.f32.mxu0 %v374_v29  ;;  %600 = vmatprep.mubr.f32.mxu1 %v406_v31 }
  0xb8   : > { %2402 = vmatpush3.bf16.xpose.msra.mxu1 %v3331_v23  ;;  %2470 = vmatpush1.bf16.msra.mxu0 %v3279_v6  ;;  %v421_v6 = vld [vmem:[%s3252_s6 + $0x1b0] sm:$0xff] }
  0xb9   : > { %2404 = vmatprep.subr.bf16.mxu1 %v3346_v32  ;;  %2472 = vmatprep.subr.bf16.mxu0 %v3281_v7  ;;  %v424_v7 = vld [vmem:[%s3252_s6 + $0x1c8] sm:$0xff] }
  0xba   : > { %521 = vmatmul.mubr.f32.gmra.mrb[6].mxu0 %v373_v33  ;;  %601 = vmatmul.mubr.f32.gmra.mrb[6].mxu1 %v405_v35 }
  0xbb   : > { %525 = vmatprep.mubr.f32.mxu0 %v376_v34  ;;  %605 = vmatprep.mubr.f32.mxu1 %v408_v36 }
  0xbc   : > { %2474 = vmatpush1.bf16.msra.mxu0 %v3288_v9  ;;  %v394_v9 = vld [vmem:[%s3252_s6 + $0xd8] sm:$0xff] }
  0xbd   : > { %2476 = vmatprep.subr.bf16.mxu0 %v3290_v10  ;;  %v423_v10 = vld [vmem:[%s3252_s6 + $0x1c0] sm:$0xff] }
  0xbe   : > { %526 = vmatmul.mubr.f32.gmra.mrb[8].mxu0 %v375_v37  ;;  %606 = vmatmul.mubr.f32.gmra.mrb[8].mxu1 %v407_v39 }
  0xbf   : > { %530 = vmatprep.mubr.f32.mxu0 %v378_v38  ;;  %610 = vmatprep.mubr.f32.mxu1 %v410_v40 }
  0xc0   : > { %2406 = vmatpush3.bf16.xpose.msra.mxu1 %v3346_v32  ;;  %2478 = vmatpush1.bf16.msra.mxu0 %v3296_v11  ;;  %v426_v11 = vld [vmem:[%s3252_s6 + $0x1d8] sm:$0xff] }
  0xc1   : > { %2408 = vmatprep.subr.bf16.mxu1 %v3362_v41  ;;  %2480 = vmatprep.subr.bf16.mxu0 %v3298_v12  ;;  %v393_v12 = vld [vmem:[%s3252_s6 + $0xd0] sm:$0xff] }
  0xc2   : > { %531 = vmatmul.mubr.f32.gmra.mrb[10].mxu0 %v377_v42  ;;  %611 = vmatmul.mubr.f32.gmra.mrb[10].mxu1 %v409_v44 }
  0xc3   : > { %535 = vmatprep.mubr.f32.mxu0 %v380_v43  ;;  %615 = vmatprep.mubr.f32.mxu1 %v412_v45 }
  0xc4   : > { %2482 = vmatpush1.bf16.msra.mxu0 %v3304_v13  ;;  %v396_v13 = vld [vmem:[%s3252_s6 + $0xe8] sm:$0xff] }
  0xc5   : > { %2484 = vmatprep.subr.bf16.mxu0 %v3306_v14  ;;  %v425_v14 = vld [vmem:[%s3252_s6 + $0x1d0] sm:$0xff] }
  0xc6   : > { %536 = vmatmul.mubr.f32.gmra.mrb[12].mxu0 %v379_v46  ;;  %616 = vmatmul.mubr.f32.gmra.mrb[12].mxu1 %v411_v48 }
  0xc7   : > { %540 = vmatprep.mubr.f32.mxu0 %v382_v47  ;;  %620 = vmatprep.mubr.f32.mxu1 %v414_v49 }
  0xc8   : > { %2410 = vmatpush3.bf16.xpose.msra.mxu1 %v3362_v41  ;;  %2486 = vmatpush1.bf16.msra.mxu0 %v3312_v15  ;;  %v428_v15 = vld [vmem:[%s3252_s6 + $0x1e8] sm:$0xff] }
  0xc9   : > { %2412 = vmatprep.subr.bf16.mxu1 %v3378_v50  ;;  %2488 = vmatprep.subr.bf16.mxu0 %v3314_v16  ;;  %v395_v16 = vld [vmem:[%s3252_s6 + $0xe0] sm:$0xff] }
  0xca   : > { %541 = vmatmul.mubr.f32.gmra.mrb[14].mxu0 %v381_v51  ;;  %621 = vmatmul.mubr.f32.gmra.mrb[14].mxu1 %v413_v53 }
  0xcb   : > { %545 = vmatprep.mubr.f32.mxu0 %v384_v52  ;;  %625 = vmatprep.mubr.f32.mxu1 %v416_v54 }
  0xcc   : > { %2490 = vmatpush1.bf16.msra.mxu0 %v3320_v17  ;;  %v398_v17 = vld [vmem:[%s3252_s6 + $0xf8] sm:$0xff] }
  0xce   : > { %546 = vmatmul.mubr.f32.gmra.mrb[16].mxu0 %v383_v55  ;;  %626 = vmatmul.mubr.f32.gmra.mrb[16].mxu1 %v415_v57 }
  0xcf   : > { %550 = vmatprep.mubr.f32.mxu0 %v386_v56  ;;  %630 = vmatprep.mubr.f32.mxu1 %v418_v58 }
  0xd0   : > { %2414 = vmatpush3.bf16.xpose.msra.mxu1 %v3378_v50 }
  0xd1   : > { %2416 = vmatprep.subr.bf16.mxu1 %v3394_v59 }
  0xd2   : > { %551 = vmatmul.mubr.f32.gmra.mrb[18].mxu0 %v385_v60  ;;  %631 = vmatmul.mubr.f32.gmra.mrb[18].mxu1 %v417_v62 }
  0xd3   : > { %555 = vmatprep.mubr.f32.mxu0 %v388_v61  ;;  %635 = vmatprep.mubr.f32.mxu1 %v420_v63 }
  0xd6   : > { %556 = vmatmul.mubr.f32.gmra.mrb[20].mxu0 %v387_v0  ;;  %636 = vmatmul.mubr.f32.gmra.mrb[20].mxu1 %v419_v2 }
  0xd7   : > { %560 = vmatprep.mubr.f32.mxu0 %v390_v1  ;;  %640 = vmatprep.mubr.f32.mxu1 %v422_v3 }
  0xd8   : > { %2418 = vmatpush3.bf16.xpose.msra.mxu1 %v3394_v59 }
  0xd9   : > { %2420 = vmatprep.subr.bf16.mxu1 %v3425_v24 }
  0xda   : > { %561 = vmatmul.mubr.f32.gmra.mrb[22].mxu0 %v389_v4  ;;  %641 = vmatmul.mubr.f32.gmra.mrb[22].mxu1 %v421_v6 }
  0xdb   : > { %565 = vmatprep.mubr.f32.mxu0 %v392_v5  ;;  %645 = vmatprep.mubr.f32.mxu1 %v424_v7 }
  0xde   : > { %566 = vmatmul.mubr.f32.gmra.mrb[24].mxu0 %v391_v8  ;;  %646 = vmatmul.mubr.f32.gmra.mrb[24].mxu1 %v423_v10 }
  0xdf   : > { %570 = vmatprep.mubr.f32.mxu0 %v394_v9  ;;  %650 = vmatprep.mubr.f32.mxu1 %v426_v11 }
  0xe0   : > { %2422 = vmatpush3.bf16.xpose.msra.mxu1 %v3425_v24 }
  0xe1   : > { %2424 = vmatprep.subr.bf16.mxu1 %v3429_v25 }
  0xe2   : > { %571 = vmatmul.mubr.f32.gmra.mrb[26].mxu0 %v393_v12  ;;  %651 = vmatmul.mubr.f32.gmra.mrb[26].mxu1 %v425_v14 }
  0xe3   : > { %575 = vmatprep.mubr.f32.mxu0 %v396_v13  ;;  %655 = vmatprep.mubr.f32.mxu1 %v428_v15 }
  0xe6   : > { %576 = vmatmul.mubr.f32.gmra.mrb[28].mxu0 %v395_v16  ;;  %656 = vmatmul.mubr.f32.gmra.mrb[28].mxu1 %v427_v19 }
  0xe7   : > { %580 = vmatprep.mubr.f32.mxu0 %v398_v17  ;;  %660 = vmatprep.mubr.f32.mxu1 %v430_v20 }
  0xe8   : > { %2426 = vmatpush3.bf16.xpose.msra.mxu1 %v3429_v25 }
  0xe9   : > { %2428 = vmatprep.subr.bf16.mxu1 %v3322_v18 }
  0xea   : > { %581 = vmatmul.mubr.f32.gmra.mrb[30].mxu0 %v397_v21  ;;  %661 = vmatmul.mubr.f32.gmra.mrb[30].mxu1 %v429_v22 }
 0x181   : > { %v507_v27 = vpop.f32.mrb[0].mxu0  ;;  %v3440_v30 = vpop.f32.mrb[0].mxu1 }
 0x182   : > { %v508_v28 = vadd.f32 %v3437_v26, %v507_v27  ;;  %v509_v29 = vpop.f32.mrb[1].mxu0  ;;  %v589_v31 = vpop.f32.mrb[1].mxu1 }
 0x184   : > { %v666_v33 = vmul.f32 0.5, %v508_v28 }
 0x185   : > { %v512_v34 = vpop.f32.mrb[2].mxu0  ;;  %v592_v37 = vpop.f32.mrb[2].mxu1 }
 0x186   : > { %2646 = vtanh.f32 %v666_v33  ;;  %v513_v35 = vadd.f32 %v3437_v26, %v512_v34  ;;  %v514_v36 = vpop.f32.mrb[3].mxu0  ;;  %v3444_v38 = vadd.f32 %v3437_v26, %v592_v37  ;;  %v594_v39 = vpop.f32.mrb[3].mxu1 }
 0x188   : > { %v667_v40 = vmul.f32 0.5, %v513_v35 }
 0x189   : > { %v517_v42 = vpop.f32.mrb[4].mxu0  ;;  %v597_v45 = vpop.f32.mrb[4].mxu1 }
 0x18a   : > { %2648 = vtanh.f32 %v667_v40  ;;  %v518_v43 = vadd.f32 %v3437_v26, %v517_v42  ;;  %v519_v44 = vpop.f32.mrb[5].mxu0  ;;  %v3448_v46 = vadd.f32 %v3437_v26, %v597_v45  ;;  %v599_v47 = vpop.f32.mrb[5].mxu1 }
 0x18c   : > { %v668_v48 = vmul.f32 0.5, %v518_v43 }
 0x18d   : > { %v522_v49 = vpop.f32.mrb[6].mxu0  ;;  %v602_v53 = vpop.f32.mrb[6].mxu1 }
 0x18e   : > { %2650 = vtanh.f32 %v668_v48  ;;  %v523_v51 = vadd.f32 %v3437_v26, %v522_v49  ;;  %v524_v52 = vpop.f32.mrb[7].mxu0  ;;  %v3452_v54 = vadd.f32 %v3437_v26, %v602_v53  ;;  %v604_v55 = vpop.f32.mrb[7].mxu1 }
 0x190   : > { %v2647_v56 = vpop.eup %2646  ;;  %v669_v57 = vmul.f32 0.5, %v523_v51 }
 0x191   : > { %v730_v58 = vmul.f32 0.5, %v2647_v56  ;;  %v527_v60 = vpop.f32.mrb[8].mxu0  ;;  %v607_v63 = vpop.f32.mrb[8].mxu1 }
 0x192   : > { %2652 = vtanh.f32 %v669_v57  ;;  %v528_v61 = vadd.f32 %v3437_v26, %v527_v60  ;;  %v529_v62 = vpop.f32.mrb[9].mxu0  ;;  %v3456_v1 = vadd.f32 %v3437_v26, %v607_v63  ;;  %v609_v2 = vpop.f32.mrb[9].mxu1 }
 0x193   : > { %v762_v0 = vadd.f32 0.5, %v730_v58 }
 0x194   : > { %v2649_v3 = vpop.eup %2648  ;;  %v670_v4 = vmul.f32 0.5, %v528_v61 }
 0x195   : > { %v731_v5 = vmul.f32 0.5, %v2649_v3  ;;  %v532_v6 = vpop.f32.mrb[10].mxu0  ;;  %2235 = vmatprep.mubr.f32.mxu1 %v762_v0  ;;  %v612_v9 = vpop.f32.mrb[10].mxu1 }
 0x196   : > { %2654 = vtanh.f32 %v670_v4  ;;  %v533_v7 = vadd.f32 %v3437_v26, %v532_v6  ;;  %v534_v8 = vpop.f32.mrb[11].mxu0  ;;  %v3460_v11 = vadd.f32 %v3437_v26, %v612_v9  ;;  %v614_v12 = vpop.f32.mrb[11].mxu1 }
 0x197   : > { %v763_v10 = vadd.f32 0.5, %v731_v5 }
 0x198   : > { %v2651_v13 = vpop.eup %2650  ;;  %v671_v14 = vmul.f32 0.5, %v533_v7 }
 0x199   : > { %v732_v15 = vmul.f32 0.5, %v2651_v13  ;;  %v537_v16 = vpop.f32.mrb[12].mxu0  ;;  %2236 = vmatmul.mubr.f32.vlgmr.msra.gmra.mrb[32].mxu1 %v763_v10  ;;  %v617_v20 = vpop.f32.mrb[12].mxu1 }
 0x19a   : > { %2656 = vtanh.f32 %v671_v14  ;;  %v538_v17 = vadd.f32 %v3437_v26, %v537_v16  ;;  %v539_v19 = vpop.f32.mrb[13].mxu0  ;;  %2430 = vmatpush3.bf16.msra.mxu1 %v3322_v18  ;;  %v3465_v22 = vadd.f32 %v3437_v26, %v617_v20  ;;  %v619_v27 = vpop.f32.mrb[13].mxu1 }
 0x19b   : > { %v764_v21 = vadd.f32 0.5, %v732_v15  ;;  %2432 = vmatprep.subr.bf16.mxu1 %v3331_v23 }
 0x19c   : > { %v2653_v28 = vpop.eup %2652  ;;  %v672_v29 = vmul.f32 0.5, %v538_v17 }
 0x19d   : > { %v733_v31 = vmul.f32 0.5, %v2653_v28  ;;  %v542_v33 = vpop.f32.mrb[14].mxu0  ;;  %2238 = vmatprep.mubr.f32.mxu1 %v764_v21  ;;  %v622_v36 = vpop.f32.mrb[14].mxu1 }
 0x19e   : > { %2658 = vtanh.f32 %v672_v29  ;;  %v543_v34 = vadd.f32 %v3437_v26, %v542_v33  ;;  %v544_v35 = vpop.f32.mrb[15].mxu0  ;;  %2434 = vmatpush3.bf16.msra.mxu1 %v3331_v23  ;;  %v3471_v37 = vadd.f32 %v3437_v26, %v622_v36  ;;  %v624_v39 = vpop.f32.mrb[15].mxu1 }
 0x19f   : > { %v765_v18 = vadd.f32 0.5, %v733_v31  ;;  %2436 = vmatprep.subr.bf16.mxu1 %v3346_v32 }
 0x1a0   : > { %v2655_v40 = vpop.eup %2654  ;;  %v673_v42 = vmul.f32 0.5, %v543_v34 }
 0x1a1   : > { %v734_v43 = vmul.f32 0.5, %v2655_v40  ;;  %v547_v44 = vpop.f32.mrb[16].mxu0  ;;  %2239 = vmatmul.mubr.f32.gmra.mrb[34].mxu1 %v765_v18  ;;  %v627_v48 = vpop.f32.mrb[16].mxu1 }
 0x1a2   : > { %2660 = vtanh.f32 %v673_v42  ;;  %v548_v45 = vadd.f32 %v3437_v26, %v547_v44  ;;  %v549_v47 = vpop.f32.mrb[17].mxu0  ;;  %2438 = vmatpush3.bf16.msra.mxu1 %v3346_v32  ;;  %v3477_v49 = vadd.f32 %v3437_v26, %v627_v48  ;;  %v629_v51 = vpop.f32.mrb[17].mxu1  ;;  %v588_v42 = vadd.f32 %v3437_v26, %v3440_v30 }
 0x1a3   : > { %v766_v23 = vadd.f32 0.5, %v734_v43  ;;  %2440 = vmatprep.subr.bf16.mxu1 %v3362_v41 }
 0x1a4   : > { %v2657_v52 = vpop.eup %2656  ;;  %v674_v53 = vmul.f32 0.5, %v548_v45 }
 0x1a5   : > { %v735_v55 = vmul.f32 0.5, %v2657_v52  ;;  %v552_v56 = vpop.f32.mrb[18].mxu0  ;;  %2241 = vmatprep.mubr.f32.mxu1 %v766_v23  ;;  %v632_v60 = vpop.f32.mrb[18].mxu1 }
 0x1a6   : > { %2662 = vtanh.f32 %v674_v53  ;;  %v553_v57 = vadd.f32 %v3437_v26, %v552_v56  ;;  %v554_v58 = vpop.f32.mrb[19].mxu0  ;;  %2442 = vmatpush3.bf16.msra.mxu1 %v3362_v41  ;;  %v3483_v61 = vadd.f32 %v3437_v26, %v632_v60  ;;  %v634_v62 = vpop.f32.mrb[19].mxu1 }
 0x1a7   : > { %v767_v32 = vadd.f32 0.5, %v735_v55  ;;  %2444 = vmatprep.subr.bf16.mxu1 %v3378_v50  ;;  %v682_v55 = vmul.f32 0.5, %v588_v42 }
 0x1a8   : > { %v2659_v63 = vpop.eup %2658  ;;  %v675_v0 = vmul.f32 0.5, %v553_v57 }
 0x1a9   : > { %v736_v2 = vmul.f32 0.5, %v2659_v63  ;;  %v557_v3 = vpop.f32.mrb[20].mxu0  ;;  %2242 = vmatmul.mubr.f32.gmra.mrb[36].mxu1 %v767_v32  ;;  %v637_v6 = vpop.f32.mrb[20].mxu1  ;;  %v683_v63 = vmul.f32 0.5, %v3444_v38  ;;  %v685_v38 = vmul.f32 0.5, %v3452_v54  ;;  %v689_v54 = vmul.f32 0.5, %v3471_v37 }
 0x1aa   : > { %2664 = vtanh.f32 %v675_v0  ;;  %v558_v4 = vadd.f32 %v3437_v26, %v557_v3  ;;  %v559_v5 = vpop.f32.mrb[21].mxu0  ;;  %2446 = vmatpush3.bf16.msra.mxu1 %v3378_v50  ;;  %v3489_v7 = vadd.f32 %v3437_v26, %v637_v6  ;;  %v639_v8 = vpop.f32.mrb[21].mxu1  ;;  %v684_v3 = vmul.f32 0.5, %v3448_v46 }
 0x1ab   : > { %v768_v41 = vadd.f32 0.5, %v736_v2  ;;  %2448 = vmatprep.subr.bf16.mxu1 %v3394_v59  ;;  %v686_v46 = vmul.f32 0.5, %v3456_v1  ;;  %v690_v1 = vmul.f32 0.5, %v3477_v49 }
 0x1ac   : > { %v2661_v9 = vpop.eup %2660  ;;  %v676_v10 = vmul.f32 0.5, %v558_v4 }
 0x1ad   : > { %v737_v12 = vmul.f32 0.5, %v2661_v9  ;;  %v562_v13 = vpop.f32.mrb[22].mxu0  ;;  %2244 = vmatprep.mubr.f32.mxu1 %v768_v41  ;;  %v642_v16 = vpop.f32.mrb[22].mxu1 }
 0x1ae   : > { %2666 = vtanh.f32 %v676_v10  ;;  %v563_v14 = vadd.f32 %v3437_v26, %v562_v13  ;;  %v564_v15 = vpop.f32.mrb[23].mxu0  ;;  %2450 = vmatpush3.bf16.msra.mxu1 %v3394_v59  ;;  %v3495_v17 = vadd.f32 %v3437_v26, %v642_v16  ;;  %v644_v19 = vpop.f32.mrb[23].mxu1  ;;  %v687_v16 = vmul.f32 0.5, %v3460_v11 }
 0x1af   : > { %v769_v50 = vadd.f32 0.5, %v737_v12  ;;  %2452 = vmatprep.subr.bf16.mxu1 %v3425_v24 }
 0x1b0   : > { %v2663_v20 = vpop.eup %2662  ;;  %v677_v21 = vmul.f32 0.5, %v563_v14  ;;  %v693_v49 = vmul.f32 0.5, %v3495_v17 }
 0x1b1   : > { %v738_v27 = vmul.f32 0.5, %v2663_v20  ;;  %v567_v28 = vpop.f32.mrb[24].mxu0  ;;  %2245 = vmatmul.mubr.f32.gmra.mrb[38].mxu1 %v769_v50  ;;  %v647_v33 = vpop.f32.mrb[24].mxu1 }
 0x1b2   : > { %2668 = vtanh.f32 %v677_v21  ;;  %v568_v29 = vadd.f32 %v3437_v26, %v567_v28  ;;  %v569_v31 = vpop.f32.mrb[25].mxu0  ;;  %2454 = vmatpush3.bf16.msra.mxu1 %v3425_v24  ;;  %v3501_v34 = vadd.f32 %v3437_v26, %v647_v33  ;;  %v649_v35 = vpop.f32.mrb[25].mxu1 }
 0x1b3   : > { %v770_v59 = vadd.f32 0.5, %v738_v27  ;;  %2456 = vmatprep.subr.bf16.mxu1 %v3429_v25 }
 0x1b4   : > { %v2665_v36 = vpop.eup %2664  ;;  %v678_v18 = vmul.f32 0.5, %v568_v29 }
 0x1b5   : > { %v739_v39 = vmul.f32 0.5, %v2665_v36  ;;  %v572_v40 = vpop.f32.mrb[26].mxu0  ;;  %2247 = vmatprep.mubr.f32.mxu1 %v770_v59  ;;  %v652_v24 = vpop.f32.mrb[26].mxu1  ;;  %v691_v59 = vmul.f32 0.5, %v3483_v61  ;;  %v692_v36 = vmul.f32 0.5, %v3489_v7  ;;  %v694_v61 = vmul.f32 0.5, %v3501_v34 }
 0x1b6   : > { %2670 = vtanh.f32 %v678_v18  ;;  %v573_v43 = vadd.f32 %v3437_v26, %v572_v40  ;;  %v574_v44 = vpop.f32.mrb[27].mxu0  ;;  %2458 = vmatpush3.bf16.msra.mxu1 %v3429_v25  ;;  %v3509_v47 = vadd.f32 %v3437_v26, %v652_v24  ;;  %v654_v48 = vpop.f32.mrb[27].mxu1 }
 0x1b7   : > { %v771_v45 = vadd.f32 0.5, %v739_v39 }
 0x1b8   : > { %v2667_v23 = vpop.eup %2666  ;;  %v679_v51 = vmul.f32 0.5, %v573_v43  ;;  %v695_v7 = vmul.f32 0.5, %v3509_v47 }
 0x1b9   : > { %v740_v52 = vmul.f32 0.5, %v2667_v23  ;;  %v577_v53 = vpop.f32.mrb[28].mxu0  ;;  %2248 = vmatmul.mubr.f32.gmra.mrb[40].mxu1 %v771_v45  ;;  %v657_v57 = vpop.f32.mrb[28].mxu1 }
 0x1ba   : > { %2672 = vtanh.f32 %v679_v51  ;;  %v578_v30 = vadd.f32 %v3437_v26, %v577_v53  ;;  %v579_v56 = vpop.f32.mrb[29].mxu0  ;;  %v3513_v60 = vadd.f32 %v3437_v26, %v657_v57  ;;  %v659_v25 = vpop.f32.mrb[29].mxu1 }
 0x1bb   : > { %v772_v58 = vadd.f32 0.5, %v740_v52  ;;  %2674 = vtanh.f32 %v682_v55 }
 0x1bc   : > { %v2669_v32 = vpop.eup %2668  ;;  %v680_v62 = vmul.f32 0.5, %v578_v30  ;;  %v696_v17 = vmul.f32 0.5, %v3513_v60 }
 0x1bd   : > { %v741_v0 = vmul.f32 0.5, %v2669_v32  ;;  %v582_v2 = vpop.f32.mrb[30].mxu0  ;;  %2250 = vmatprep.mubr.f32.mxu1 %v772_v58  ;;  %v662_v6 = vpop.f32.mrb[30].mxu1 }
 0x1be   : > { %2676 = vtanh.f32 %v680_v62  ;;  %v583_v4 = vadd.f32 %v3437_v26, %v582_v2  ;;  %v584_v5 = vpop.f32.mrb[31].mxu0  ;;  %v3519_v8 = vadd.f32 %v3437_v26, %v662_v6  ;;  %v664_v9 = vpop.f32.mrb[31].mxu1  ;;  %v688_v26 = vmul.f32 0.5, %v3465_v22 }
 0x1bf   : > { %v773_v41 = vadd.f32 0.5, %v741_v0  ;;  %2678 = vtanh.f32 %v683_v63 }
 0x1c0   : > { %v2671_v10 = vpop.eup %2670  ;;  %v681_v12 = vmul.f32 0.5, %v583_v4  ;;  %2680 = vtanh.f32 %v684_v3  ;;  %v697_v34 = vmul.f32 0.5, %v3519_v8 }
 0x1c1   : > { %v742_v13 = vmul.f32 0.5, %v2671_v10  ;;  %2251 = vmatmul.mubr.f32.gmra.mrb[42].mxu1 %v773_v41 }
 0x1c2   : > { %2682 = vtanh.f32 %v681_v12 }
 0x1c3   : > { %v774_v14 = vadd.f32 0.5, %v742_v13  ;;  %2684 = vtanh.f32 %v685_v38 }
 0x1c4   : > { %v2673_v15 = vpop.eup %2672  ;;  %2686 = vtanh.f32 %v686_v46 }
 0x1c5   : > { %v743_v50 = vmul.f32 0.5, %v2673_v15  ;;  %2253 = vmatprep.mubr.f32.mxu1 %v774_v14  ;;  %v2675_v19 = vpop.eup %2674  ;;  %2688 = vtanh.f32 %v687_v16 }
 0x1c6   : > { %2690 = vtanh.f32 %v688_v26  ;;  %v746_v29 = vmul.f32 0.5, %v2675_v19  ;;  %v3537_v19 = vld [vmem:[%s3901_s3 + $0x1] ss:$0 sm:$0xff] }
 0x1c7   : > { %v775_v20 = vadd.f32 0.5, %v743_v50  ;;  %2692 = vtanh.f32 %v689_v54 }
 0x1c8   : > { %v2677_v21 = vpop.eup %2676  ;;  %2694 = vtanh.f32 %v690_v1  ;;  %v778_v39 = vadd.f32 0.5, %v746_v29 }
 0x1c9   : > { %v744_v27 = vmul.f32 0.5, %v2677_v21  ;;  %2254 = vmatmul.mubr.f32.gmra.mrb[44].mxu1 %v775_v20  ;;  %v2679_v28 = vpop.eup %2678  ;;  %2696 = vtanh.f32 %v691_v59 }
 0x1ca   : > { %v2681_v31 = vpop.eup %2680  ;;  %v747_v35 = vmul.f32 0.5, %v2679_v28  ;;  %2698 = vtanh.f32 %v692_v36 }
 0x1cb   : > { %v776_v11 = vadd.f32 0.5, %v744_v27  ;;  %v748_v18 = vmul.f32 0.5, %v2681_v31  ;;  %2700 = vtanh.f32 %v693_v49 }
 0x1cc   : > { %v2683_v33 = vpop.eup %2682  ;;  %v779_v44 = vadd.f32 0.5, %v747_v35  ;;  %2702 = vtanh.f32 %v694_v61 }
 0x1cd   : > { %v745_v22 = vmul.f32 0.5, %v2683_v33  ;;  %2256 = vmatprep.mubr.f32.mxu1 %v776_v11  ;;  %v2685_v37 = vpop.eup %2684  ;;  %v780_v48 = vadd.f32 0.5, %v748_v18  ;;  %2704 = vtanh.f32 %v695_v7 }
 0x1ce   : > { %v2687_v40 = vpop.eup %2686  ;;  %v749_v43 = vmul.f32 0.5, %v2685_v37  ;;  %2706 = vtanh.f32 %v696_v17 }
 0x1cf   : > { %v777_v42 = vadd.f32 0.5, %v745_v22  ;;  %v2689_v24 = vpop.eup %2688  ;;  %v750_v45 = vmul.f32 0.5, %v2687_v40  ;;  %2708 = vtanh.f32 %v697_v34 }
 0x1d0   : > { %v2691_v23 = vpop.eup %2690  ;;  %v751_v51 = vmul.f32 0.5, %v2689_v24  ;;  %v781_v52 = vadd.f32 0.5, %v749_v43 }
 0x1d1   : > { %2257 = vmatmul.mubr.f32.gmra.mrb[46].mxu1 %v777_v42  ;;  %v2693_v53 = vpop.eup %2692  ;;  %v752_v55 = vmul.f32 0.5, %v2691_v23  ;;  %v782_v30 = vadd.f32 0.5, %v750_v45 }
 0x1d2   : > { %2259 = vmatprep.mubr.f32.mxu1 %v778_v39  ;;  %v2695_v56 = vpop.eup %2694  ;;  %v753_v57 = vmul.f32 0.5, %v2693_v53  ;;  %v783_v58 = vadd.f32 0.5, %v751_v51 }
 0x1d3   : > { %v2697_v25 = vpop.eup %2696  ;;  %v754_v47 = vmul.f32 0.5, %v2695_v56  ;;  %v784_v32 = vadd.f32 0.5, %v752_v55 }
 0x1d4   : > { %v2699_v62 = vpop.eup %2698  ;;  %v755_v63 = vmul.f32 0.5, %v2697_v25  ;;  %v785_v60 = vadd.f32 0.5, %v753_v57 }
 0x1d5   : > { %2260 = vmatmul.mubr.f32.gmra.mrb[48].mxu1 %v779_v44  ;;  %v2701_v0 = vpop.eup %2700  ;;  %v756_v2 = vmul.f32 0.5, %v2699_v62  ;;  %v786_v3 = vadd.f32 0.5, %v754_v47 }
 0x1d6   : > { %2262 = vmatprep.mubr.f32.mxu1 %v780_v48  ;;  %v2703_v4 = vpop.eup %2702  ;;  %v757_v5 = vmul.f32 0.5, %v2701_v0  ;;  %v787_v6 = vadd.f32 0.5, %v755_v63 }
 0x1d7   : > { %v2705_v41 = vpop.eup %2704  ;;  %v758_v8 = vmul.f32 0.5, %v2703_v4  ;;  %v788_v9 = vadd.f32 0.5, %v756_v2 }
 0x1d8   : > { %v2707_v10 = vpop.eup %2706  ;;  %v759_v12 = vmul.f32 0.5, %v2705_v41  ;;  %v789_v38 = vadd.f32 0.5, %v757_v5 }
 0x1d9   : > { %2263 = vmatmul.mubr.f32.gmra.mrb[50].mxu1 %v781_v52  ;;  %v2709_v13 = vpop.eup %2708  ;;  %v760_v46 = vmul.f32 0.5, %v2707_v10  ;;  %v790_v14 = vadd.f32 0.5, %v758_v8 }
 0x1da   : > { %2265 = vmatprep.mubr.f32.mxu1 %v782_v30  ;;  %v761_v15 = vmul.f32 0.5, %v2709_v13  ;;  %v791_v16 = vadd.f32 0.5, %v759_v12 }
 0x1db   : > { %v792_v50 = vadd.f32 0.5, %v760_v46 }
 0x1dc   : > { %v793_v26 = vadd.f32 0.5, %v761_v15 }
 0x1dd   : > { %2266 = vmatmul.mubr.f32.gmra.mrb[52].mxu1 %v783_v58 }
 0x1de   : > { %2268 = vmatprep.mubr.f32.mxu1 %v784_v32 }
 0x1e1   : > { %2269 = vmatmul.mubr.f32.gmra.mrb[54].mxu1 %v785_v60 }
 0x1e2   : > { %2271 = vmatprep.mubr.f32.mxu1 %v786_v3 }
 0x1e5   : > { %2272 = vmatmul.mubr.f32.gmra.mrb[56].mxu1 %v787_v6 }
 0x1e6   : > { %2274 = vmatprep.mubr.f32.mxu1 %v788_v9 }
 0x1e9   : > { %2275 = vmatmul.mubr.f32.gmra.mrb[58].mxu1 %v789_v38 }
 0x1ea   : > { %2277 = vmatprep.mubr.f32.mxu1 %v790_v14 }
 0x1ed   : > { %2278 = vmatmul.mubr.f32.gmra.mrb[60].mxu1 %v791_v16 }
 0x1ee   : > { %2280 = vmatprep.mubr.f32.mxu1 %v792_v50 }
 0x1f1   : > { %2281 = vmatmul.mubr.f32.gmra.mrb[62].mxu1 %v793_v26 }
 0x26c   : > { %v2237_v20 = vpop.f32.mrb[32].mxu1 }
 0x26d   : > { %v872_v21 = vadd.f32 %v2237_v20, %v3537_v19  ;;  %v866_v54 = vpop.f32.mrb[33].mxu1 }
 0x26e   : > { %v867_v27 = vadd.f32 %v3537_v19, %v866_v54 }
 0x26f   : > { %v1026_v1 = vmul.f32 0.5, %v872_v21 }
 0x270   : > { %v1025_v28 = vmul.f32 0.5, %v867_v27 }
 0x271   : > { %2710 = vtanh.f32 %v1026_v1 }
 0x272   : > { %2712 = vtanh.f32 %v1025_v28 }
 0x274   : > { %v2240_v29 = vpop.f32.mrb[34].mxu1 }
 0x275   : > { %v882_v31 = vadd.f32 %v2240_v29, %v3537_v19  ;;  %v876_v11 = vpop.f32.mrb[35].mxu1 }
 0x276   : > { %v877_v33 = vadd.f32 %v3537_v19, %v876_v11 }
 0x277   : > { %v1028_v59 = vmul.f32 0.5, %v882_v31 }
 0x278   : > { %v1027_v22 = vmul.f32 0.5, %v877_v33 }
 0x279   : > { %2714 = vtanh.f32 %v1028_v59 }
 0x27a   : > { %2716 = vtanh.f32 %v1027_v22 }
 0x27b   : > { %v2711_v35 = vpop.eup %2710 }
 0x27c   : > { %v2713_v36 = vpop.eup %2712  ;;  %v1090_v37 = vmul.f32 0.5, %v2711_v35  ;;  %v2243_v18 = vpop.f32.mrb[36].mxu1 }
 0x27d   : > { %v1089_v39 = vmul.f32 0.5, %v2713_v36  ;;  %v892_v40 = vadd.f32 %v2243_v18, %v3537_v19  ;;  %v886_v42 = vpop.f32.mrb[37].mxu1 }
 0x27e   : > { %v1122_v49 = vadd.f32 0.5, %v1090_v37  ;;  %v887_v43 = vadd.f32 %v3537_v19, %v886_v42 }
 0x27f   : > { %v1030_v44 = vmul.f32 0.5, %v892_v40  ;;  %v1121_v61 = vadd.f32 0.5, %v1089_v39 }
 0x280   : > { %1154 = vst [vmem:[%s3546_s13 + $0x8] sm:$0xff] %v1122_v49  ;;  %v1029_v24 = vmul.f32 0.5, %v887_v43 }
 0x281   : > { %2718 = vtanh.f32 %v1030_v44  ;;  %1153 = vst [vmem:[%s3546_s13] sm:$0xff] %v1121_v61  ;;  %2315 = vmatprep.mubr.f32.mxu1 %v1121_v61 }
 0x282   : > { %2720 = vtanh.f32 %v1029_v24  ;;  %2316 = vmatmul.mubr.f32.vlgmr.msra.gmra.mrb[64].mxu1 %v1122_v49 }
 0x283   : > { %v2715_v45 = vpop.eup %2714 }
 0x284   : > { %v2717_v48 = vpop.eup %2716  ;;  %v1092_v23 = vmul.f32 0.5, %v2715_v45  ;;  %v2246_v7 = vpop.f32.mrb[38].mxu1 }
 0x285   : > { %v1091_v51 = vmul.f32 0.5, %v2717_v48  ;;  %v902_v52 = vadd.f32 %v2246_v7, %v3537_v19  ;;  %v896_v17 = vpop.f32.mrb[39].mxu1 }
 0x286   : > { %v897_v53 = vadd.f32 %v3537_v19, %v896_v17  ;;  %v1124_v55 = vadd.f32 0.5, %v1092_v23 }
 0x287   : > { %v1032_v30 = vmul.f32 0.5, %v902_v52  ;;  %v1123_v56 = vadd.f32 0.5, %v1091_v51 }
 0x288   : > { %v1031_v34 = vmul.f32 0.5, %v897_v53  ;;  %1156 = vst [vmem:[%s3546_s13 + $0x18] sm:$0xff] %v1124_v55 }
 0x289   : > { %2722 = vtanh.f32 %v1032_v30  ;;  %1155 = vst [vmem:[%s3546_s13 + $0x10] sm:$0xff] %v1123_v56  ;;  %2318 = vmatprep.mubr.f32.mxu1 %v1123_v56 }
 0x28a   : > { %2724 = vtanh.f32 %v1031_v34  ;;  %2319 = vmatmul.mubr.f32.gmra.mrb[66].mxu1 %v1124_v55 }
 0x28b   : > { %v2719_v57 = vpop.eup %2718 }
 0x28c   : > { %v2721_v58 = vpop.eup %2720  ;;  %v1094_v25 = vmul.f32 0.5, %v2719_v57  ;;  %v2249_v47 = vpop.f32.mrb[40].mxu1 }
 0x28d   : > { %v1093_v32 = vmul.f32 0.5, %v2721_v58  ;;  %v912_v62 = vadd.f32 %v2249_v47, %v3537_v19  ;;  %v906_v63 = vpop.f32.mrb[41].mxu1 }
 0x28e   : > { %v907_v60 = vadd.f32 %v3537_v19, %v906_v63  ;;  %v1126_v0 = vadd.f32 0.5, %v1094_v25 }
 0x28f   : > { %v1034_v2 = vmul.f32 0.5, %v912_v62  ;;  %v1125_v3 = vadd.f32 0.5, %v1093_v32 }
 0x290   : > { %v1033_v4 = vmul.f32 0.5, %v907_v60  ;;  %1158 = vst [vmem:[%s3546_s13 + $0x28] sm:$0xff] %v1126_v0 }
 0x291   : > { %2726 = vtanh.f32 %v1034_v2  ;;  %1157 = vst [vmem:[%s3546_s13 + $0x20] sm:$0xff] %v1125_v3  ;;  %2321 = vmatprep.mubr.f32.mxu1 %v1125_v3 }
 0x292   : > { %2728 = vtanh.f32 %v1033_v4  ;;  %2322 = vmatmul.mubr.f32.gmra.mrb[68].mxu1 %v1126_v0 }
 0x293   : > { %v2723_v5 = vpop.eup %2722 }
 0x294   : > { %v2725_v6 = vpop.eup %2724  ;;  %v1096_v41 = vmul.f32 0.5, %v2723_v5  ;;  %v2252_v8 = vpop.f32.mrb[42].mxu1 }
 0x295   : > { %v1095_v9 = vmul.f32 0.5, %v2725_v6  ;;  %v922_v10 = vadd.f32 %v2252_v8, %v3537_v19  ;;  %v916_v12 = vpop.f32.mrb[43].mxu1 }
 0x296   : > { %v917_v38 = vadd.f32 %v3537_v19, %v916_v12  ;;  %v1128_v13 = vadd.f32 0.5, %v1096_v41 }
 0x297   : > { %v1036_v46 = vmul.f32 0.5, %v922_v10  ;;  %v1127_v14 = vadd.f32 0.5, %v1095_v9 }
 0x298   : > { %v1035_v15 = vmul.f32 0.5, %v917_v38  ;;  %1160 = vst [vmem:[%s3546_s13 + $0x38] sm:$0xff] %v1128_v13 }
 0x299   : > { %2730 = vtanh.f32 %v1036_v46  ;;  %1159 = vst [vmem:[%s3546_s13 + $0x30] sm:$0xff] %v1127_v14  ;;  %2324 = vmatprep.mubr.f32.mxu1 %v1127_v14 }
 0x29a   : > { %2732 = vtanh.f32 %v1035_v15  ;;  %2325 = vmatmul.mubr.f32.gmra.mrb[70].mxu1 %v1128_v13 }
 0x29b   : > { %v2727_v16 = vpop.eup %2726 }
 0x29c   : > { %v2729_v50 = vpop.eup %2728  ;;  %v1098_v26 = vmul.f32 0.5, %v2727_v16  ;;  %v2255_v20 = vpop.f32.mrb[44].mxu1 }
 0x29d   : > { %v1097_v21 = vmul.f32 0.5, %v2729_v50  ;;  %v932_v54 = vadd.f32 %v2255_v20, %v3537_v19  ;;  %v926_v27 = vpop.f32.mrb[45].mxu1 }
 0x29e   : > { %v927_v1 = vadd.f32 %v3537_v19, %v926_v27  ;;  %v1130_v28 = vadd.f32 0.5, %v1098_v26 }
 0x29f   : > { %v1038_v29 = vmul.f32 0.5, %v932_v54  ;;  %v1129_v31 = vadd.f32 0.5, %v1097_v21 }
 0x2a0   : > { %v1037_v11 = vmul.f32 0.5, %v927_v1  ;;  %1162 = vst [vmem:[%s3546_s13 + $0x48] sm:$0xff] %v1130_v28 }
 0x2a1   : > { %2734 = vtanh.f32 %v1038_v29  ;;  %1161 = vst [vmem:[%s3546_s13 + $0x40] sm:$0xff] %v1129_v31  ;;  %2327 = vmatprep.mubr.f32.mxu1 %v1129_v31 }
 0x2a2   : > { %2736 = vtanh.f32 %v1037_v11  ;;  %2328 = vmatmul.mubr.f32.gmra.mrb[72].mxu1 %v1130_v28 }
 0x2a3   : > { %v2731_v33 = vpop.eup %2730 }
 0x2a4   : > { %v2733_v59 = vpop.eup %2732  ;;  %v1100_v22 = vmul.f32 0.5, %v2731_v33  ;;  %v2258_v35 = vpop.f32.mrb[46].mxu1 }
 0x2a5   : > { %v1099_v36 = vmul.f32 0.5, %v2733_v59  ;;  %v942_v37 = vadd.f32 %v2258_v35, %v3537_v19  ;;  %v936_v18 = vpop.f32.mrb[47].mxu1 }
 0x2a6   : > { %v937_v39 = vadd.f32 %v3537_v19, %v936_v18  ;;  %v1132_v40 = vadd.f32 0.5, %v1100_v22 }
 0x2a7   : > { %v1040_v42 = vmul.f32 0.5, %v942_v37  ;;  %v1131_v49 = vadd.f32 0.5, %v1099_v36 }
 0x2a8   : > { %v1039_v43 = vmul.f32 0.5, %v937_v39  ;;  %v2261_v44 = vpop.f32.mrb[48].mxu1  ;;  %1164 = vst [vmem:[%s3546_s13 + $0x58] sm:$0xff] %v1132_v40 }
 0x2a9   : > { %2738 = vtanh.f32 %v1040_v42  ;;  %v952_v61 = vadd.f32 %v2261_v44, %v3537_v19  ;;  %1163 = vst [vmem:[%s3546_s13 + $0x50] sm:$0xff] %v1131_v49  ;;  %2330 = vmatprep.mubr.f32.mxu1 %v1131_v49  ;;  %v946_v24 = vpop.f32.mrb[49].mxu1 }
 0x2aa   : > { %2740 = vtanh.f32 %v1039_v43  ;;  %v947_v45 = vadd.f32 %v3537_v19, %v946_v24  ;;  %2331 = vmatmul.mubr.f32.gmra.mrb[74].mxu1 %v1132_v40 }
 0x2ab   : > { %v2735_v48 = vpop.eup %2734  ;;  %v1042_v23 = vmul.f32 0.5, %v952_v61 }
 0x2ac   : > { %v2737_v7 = vpop.eup %2736  ;;  %v1102_v51 = vmul.f32 0.5, %v2735_v48  ;;  %v1041_v52 = vmul.f32 0.5, %v947_v45  ;;  %v2264_v17 = vpop.f32.mrb[50].mxu1 }
 0x2ad   : > { %v1101_v53 = vmul.f32 0.5, %v2737_v7  ;;  %2742 = vtanh.f32 %v1042_v23  ;;  %v962_v55 = vadd.f32 %v2264_v17, %v3537_v19  ;;  %v956_v30 = vpop.f32.mrb[51].mxu1 }
 0x2ae   : > { %2744 = vtanh.f32 %v1041_v52  ;;  %v957_v56 = vadd.f32 %v3537_v19, %v956_v30  ;;  %v1134_v34 = vadd.f32 0.5, %v1102_v51 }
 0x2af   : > { %v1044_v57 = vmul.f32 0.5, %v962_v55  ;;  %v1133_v58 = vadd.f32 0.5, %v1101_v53 }
 0x2b0   : > { %v1043_v25 = vmul.f32 0.5, %v957_v56  ;;  %1166 = vst [vmem:[%s3546_s13 + $0x68] sm:$0xff] %v1134_v34  ;;  %v2267_v47 = vpop.f32.mrb[52].mxu1 }
 0x2b1   : > { %2746 = vtanh.f32 %v1044_v57  ;;  %1165 = vst [vmem:[%s3546_s13 + $0x60] sm:$0xff] %v1133_v58  ;;  %2333 = vmatprep.mubr.f32.mxu1 %v1133_v58  ;;  %v972_v32 = vadd.f32 %v2267_v47, %v3537_v19  ;;  %v966_v62 = vpop.f32.mrb[53].mxu1 }
 0x2b2   : > { %2748 = vtanh.f32 %v1043_v25  ;;  %2334 = vmatmul.mubr.f32.gmra.mrb[76].mxu1 %v1134_v34  ;;  %v967_v63 = vadd.f32 %v3537_v19, %v966_v62 }
 0x2b3   : > { %v2739_v60 = vpop.eup %2738  ;;  %v1046_v0 = vmul.f32 0.5, %v972_v32 }
 0x2b4   : > { %v2741_v2 = vpop.eup %2740  ;;  %v1104_v3 = vmul.f32 0.5, %v2739_v60  ;;  %v1045_v4 = vmul.f32 0.5, %v967_v63  ;;  %v2270_v5 = vpop.f32.mrb[54].mxu1 }
 0x2b5   : > { %v1103_v6 = vmul.f32 0.5, %v2741_v2  ;;  %2750 = vtanh.f32 %v1046_v0  ;;  %v982_v41 = vadd.f32 %v2270_v5, %v3537_v19  ;;  %v976_v8 = vpop.f32.mrb[55].mxu1 }
 0x2b6   : > { %2752 = vtanh.f32 %v1045_v4  ;;  %v1136_v9 = vadd.f32 0.5, %v1104_v3  ;;  %v977_v10 = vadd.f32 %v3537_v19, %v976_v8 }
 0x2b7   : > { %v2743_v12 = vpop.eup %2742  ;;  %v1135_v38 = vadd.f32 0.5, %v1103_v6  ;;  %v1048_v13 = vmul.f32 0.5, %v982_v41 }
 0x2b8   : > { %v2745_v46 = vpop.eup %2744  ;;  %v1106_v14 = vmul.f32 0.5, %v2743_v12  ;;  %1168 = vst [vmem:[%s3546_s13 + $0x78] sm:$0xff] %v1136_v9  ;;  %v1047_v15 = vmul.f32 0.5, %v977_v10  ;;  %v2273_v16 = vpop.f32.mrb[56].mxu1 }
 0x2b9   : > { %v1105_v50 = vmul.f32 0.5, %v2745_v46  ;;  %1167 = vst [vmem:[%s3546_s13 + $0x70] sm:$0xff] %v1135_v38  ;;  %2336 = vmatprep.mubr.f32.mxu1 %v1135_v38  ;;  %2754 = vtanh.f32 %v1048_v13  ;;  %v992_v26 = vadd.f32 %v2273_v16, %v3537_v19  ;;  %v986_v20 = vpop.f32.mrb[57].mxu1 }
 0x2ba   : > { %2337 = vmatmul.mubr.f32.gmra.mrb[78].mxu1 %v1136_v9  ;;  %v1138_v21 = vadd.f32 0.5, %v1106_v14  ;;  %2756 = vtanh.f32 %v1047_v15  ;;  %v987_v54 = vadd.f32 %v3537_v19, %v986_v20 }
 0x2bb   : > { %v2747_v27 = vpop.eup %2746  ;;  %v1137_v1 = vadd.f32 0.5, %v1105_v50  ;;  %v1050_v28 = vmul.f32 0.5, %v992_v26 }
 0x2bc   : > { %v2749_v29 = vpop.eup %2748  ;;  %v1108_v31 = vmul.f32 0.5, %v2747_v27  ;;  %1170 = vst [vmem:[%s3546_s13 + $0x88] sm:$0xff] %v1138_v21  ;;  %v1049_v11 = vmul.f32 0.5, %v987_v54  ;;  %v2276_v33 = vpop.f32.mrb[58].mxu1  ;;  %v3037_v54 = vmov 0.0  }
 0x2bd   : > { %v1107_v59 = vmul.f32 0.5, %v2749_v29  ;;  %1169 = vst [vmem:[%s3546_s13 + $0x80] sm:$0xff] %v1137_v1  ;;  %2339 = vmatprep.mubr.f32.mxu1 %v1137_v1  ;;  %2758 = vtanh.f32 %v1050_v28  ;;  %v1002_v22 = vadd.f32 %v2276_v33, %v3537_v19  ;;  %v996_v35 = vpop.f32.mrb[59].mxu1  ;;  %1619 = vmatprep.mubr.f32.mxu0 %v3037_v54  ;;  %v3610_v27 = vld [vmem:[%s3901_s3 + $0x2] ss:$0 sm:$0xff] }
 0x2be   : > { %2340 = vmatmul.mubr.f32.gmra.mrb[80].mxu1 %v1138_v21  ;;  %v1140_v36 = vadd.f32 0.5, %v1108_v31  ;;  %2760 = vtanh.f32 %v1049_v11  ;;  %v997_v37 = vadd.f32 %v3537_v19, %v996_v35 }
 0x2bf   : > { %v2751_v18 = vpop.eup %2750  ;;  %v1139_v39 = vadd.f32 0.5, %v1107_v59  ;;  %v1052_v40 = vmul.f32 0.5, %v1002_v22 }
 0x2c0   : > { %v2753_v42 = vpop.eup %2752  ;;  %v1110_v49 = vmul.f32 0.5, %v2751_v18  ;;  %1172 = vst [vmem:[%s3546_s13 + $0x98] sm:$0xff] %v1140_v36  ;;  %v1051_v43 = vmul.f32 0.5, %v997_v37  ;;  %v2279_v44 = vpop.f32.mrb[60].mxu1 }
 0x2c1   : > { %v1109_v61 = vmul.f32 0.5, %v2753_v42  ;;  %1171 = vst [vmem:[%s3546_s13 + $0x90] sm:$0xff] %v1139_v39  ;;  %2342 = vmatprep.mubr.f32.mxu1 %v1139_v39  ;;  %2762 = vtanh.f32 %v1052_v40  ;;  %v1012_v24 = vadd.f32 %v2279_v44, %v3537_v19  ;;  %v1006_v45 = vpop.f32.mrb[61].mxu1 }
 0x2c2   : > { %2343 = vmatmul.mubr.f32.gmra.mrb[82].mxu1 %v1140_v36  ;;  %v1142_v48 = vadd.f32 0.5, %v1110_v49  ;;  %2764 = vtanh.f32 %v1051_v43  ;;  %v1007_v23 = vadd.f32 %v3537_v19, %v1006_v45 }
 0x2c3   : > { %v2755_v7 = vpop.eup %2754  ;;  %v1141_v51 = vadd.f32 0.5, %v1109_v61  ;;  %v1054_v52 = vmul.f32 0.5, %v1012_v24 }
 0x2c4   : > { %v2757_v17 = vpop.eup %2756  ;;  %v1112_v53 = vmul.f32 0.5, %v2755_v7  ;;  %1174 = vst [vmem:[%s3546_s13 + $0xa8] sm:$0xff] %v1142_v48  ;;  %v1053_v55 = vmul.f32 0.5, %v1007_v23  ;;  %v2282_v30 = vpop.f32.mrb[62].mxu1 }
 0x2c5   : > { %v1111_v56 = vmul.f32 0.5, %v2757_v17  ;;  %1173 = vst [vmem:[%s3546_s13 + $0xa0] sm:$0xff] %v1141_v51  ;;  %2345 = vmatprep.mubr.f32.mxu1 %v1141_v51  ;;  %2766 = vtanh.f32 %v1054_v52  ;;  %v1022_v34 = vadd.f32 %v2282_v30, %v3537_v19  ;;  %v1016_v57 = vpop.f32.mrb[63].mxu1 }
 0x2c6   : > { %2346 = vmatmul.mubr.f32.gmra.mrb[84].mxu1 %v1142_v48  ;;  %v1144_v58 = vadd.f32 0.5, %v1112_v53  ;;  %2768 = vtanh.f32 %v1053_v55  ;;  %v1017_v25 = vadd.f32 %v3537_v19, %v1016_v57 }
 0x2c7   : > { %v2759_v47 = vpop.eup %2758  ;;  %v1143_v32 = vadd.f32 0.5, %v1111_v56  ;;  %v1056_v62 = vmul.f32 0.5, %v1022_v34 }
 0x2c8   : > { %v2761_v63 = vpop.eup %2760  ;;  %v1114_v60 = vmul.f32 0.5, %v2759_v47  ;;  %1176 = vst [vmem:[%s3546_s13 + $0xb8] sm:$0xff] %v1144_v58  ;;  %v1055_v0 = vmul.f32 0.5, %v1017_v25 }
 0x2c9   : > { %v1113_v2 = vmul.f32 0.5, %v2761_v63  ;;  %1175 = vst [vmem:[%s3546_s13 + $0xb0] sm:$0xff] %v1143_v32  ;;  %2348 = vmatprep.mubr.f32.mxu1 %v1143_v32  ;;  %2770 = vtanh.f32 %v1056_v62 }
 0x2ca   : > { %2349 = vmatmul.mubr.f32.gmra.mrb[86].mxu1 %v1144_v58  ;;  %v1146_v3 = vadd.f32 0.5, %v1114_v60  ;;  %2772 = vtanh.f32 %v1055_v0 }
 0x2cb   : > { %v2763_v4 = vpop.eup %2762  ;;  %v1145_v19 = vadd.f32 0.5, %v1113_v2 }
 0x2cc   : > { %v2765_v5 = vpop.eup %2764  ;;  %v1116_v6 = vmul.f32 0.5, %v2763_v4  ;;  %1178 = vst [vmem:[%s3546_s13 + $0xc8] sm:$0xff] %v1146_v3 }
 0x2cd   : > { %v1115_v41 = vmul.f32 0.5, %v2765_v5  ;;  %1177 = vst [vmem:[%s3546_s13 + $0xc0] sm:$0xff] %v1145_v19  ;;  %2351 = vmatprep.mubr.f32.mxu1 %v1145_v19 }
 0x2ce   : > { %2352 = vmatmul.mubr.f32.gmra.mrb[88].mxu1 %v1146_v3  ;;  %v1148_v8 = vadd.f32 0.5, %v1116_v6 }
 0x2cf   : > { %v2767_v9 = vpop.eup %2766  ;;  %v1147_v10 = vadd.f32 0.5, %v1115_v41 }
 0x2d0   : > { %v2769_v12 = vpop.eup %2768  ;;  %v1118_v38 = vmul.f32 0.5, %v2767_v9  ;;  %1180 = vst [vmem:[%s3546_s13 + $0xd8] sm:$0xff] %v1148_v8 }
 0x2d1   : > { %v1117_v13 = vmul.f32 0.5, %v2769_v12  ;;  %1179 = vst [vmem:[%s3546_s13 + $0xd0] sm:$0xff] %v1147_v10  ;;  %2354 = vmatprep.mubr.f32.mxu1 %v1147_v10 }
 0x2d2   : > { %2355 = vmatmul.mubr.f32.gmra.mrb[90].mxu1 %v1148_v8  ;;  %v1150_v46 = vadd.f32 0.5, %v1118_v38 }
 0x2d3   : > { %v2771_v14 = vpop.eup %2770  ;;  %v1149_v15 = vadd.f32 0.5, %v1117_v13 }
 0x2d4   : > { %v2773_v16 = vpop.eup %2772  ;;  %v1120_v50 = vmul.f32 0.5, %v2771_v14  ;;  %1182 = vst [vmem:[%s3546_s13 + $0xe8] sm:$0xff] %v1150_v46 }
 0x2d5   : > { %v1119_v26 = vmul.f32 0.5, %v2773_v16  ;;  %1181 = vst [vmem:[%s3546_s13 + $0xe0] sm:$0xff] %v1149_v15  ;;  %2357 = vmatprep.mubr.f32.mxu1 %v1149_v15 }
 0x2d6   : > { %2358 = vmatmul.mubr.f32.gmra.mrb[92].mxu1 %v1150_v46  ;;  %v1152_v20 = vadd.f32 0.5, %v1120_v50 }
 0x2d7   : > { %v1151_v21 = vadd.f32 0.5, %v1119_v26 }
 0x2d8   : > { %1184 = vst [vmem:[%s3546_s13 + $0xf8] sm:$0xff] %v1152_v20 }
 0x2d9   : > { %1183 = vst [vmem:[%s3546_s13 + $0xf0] sm:$0xff] %v1151_v21  ;;  %2360 = vmatprep.mubr.f32.mxu1 %v1151_v21  ;;  %s2930_s13 = scalar_lea.vmem %s2929_s12, 8192 }
 0x2da   : > { %2361 = vmatmul.mubr.f32.gmra.mrb[94].mxu1 %v1152_v20  ;;  %p2932_p9 = scmp.lt.s32.totalorder %s2930_s13, %s2924_s10 }
 0x2dc   : > { %p2933_p12 = por %p2932_p9, %p2931_p5 }
 0x2de   : > { %p2934_p2 = pnand %p2933_p12, %p2927_p3 }
 0x355   : > { %v2317_v1 = vpop.f32.mrb[64].mxu1 }
 0x356   : > { %v1263_v28 = vadd.f32 %v2317_v1, %v3610_v27  ;;  %v1257_v29 = vpop.f32.mrb[65].mxu1 }
 0x357   : > { %v1258_v31 = vadd.f32 %v3610_v27, %v1257_v29 }
 0x358   : > { %v1417_v11 = vmul.f32 0.5, %v1263_v28 }
 0x359   : > { %v1416_v33 = vmul.f32 0.5, %v1258_v31 }
 0x35a   : > { %2774 = vtanh.f32 %v1417_v11 }
 0x35b   : > { %2776 = vtanh.f32 %v1416_v33 }
 0x35d   : > { %v2320_v59 = vpop.f32.mrb[66].mxu1 }
 0x35e   : > { %v1273_v22 = vadd.f32 %v2320_v59, %v3610_v27  ;;  %v1267_v35 = vpop.f32.mrb[67].mxu1 }
 0x35f   : > { %v1268_v36 = vadd.f32 %v3610_v27, %v1267_v35 }
 0x360   : > { %v1419_v37 = vmul.f32 0.5, %v1273_v22 }
 0x361   : > { %v1418_v18 = vmul.f32 0.5, %v1268_v36 }
 0x362   : > { %2778 = vtanh.f32 %v1419_v37 }
 0x363   : > { %2780 = vtanh.f32 %v1418_v18 }
 0x364   : > { %v2775_v39 = vpop.eup %2774 }
 0x365   : > { %v2777_v40 = vpop.eup %2776  ;;  %v2323_v42 = vpop.f32.mrb[68].mxu1  ;;  %v1481_v24 = vmul.f32 0.5, %v2775_v39 }
 0x366   : > { %v1480_v49 = vmul.f32 0.5, %v2777_v40  ;;  %v1283_v43 = vadd.f32 %v2323_v42, %v3610_v27  ;;  %v1277_v44 = vpop.f32.mrb[69].mxu1 }
 0x367   : > { %v1278_v61 = vadd.f32 %v3610_v27, %v1277_v44  ;;  %v1513_v51 = vadd.f32 0.5, %v1481_v24 }
 0x368   : > { %v1512_v45 = vadd.f32 0.5, %v1480_v49  ;;  %v1421_v48 = vmul.f32 0.5, %v1283_v43 }
 0x369   : > { %v1420_v23 = vmul.f32 0.5, %v1278_v61 }
 0x36a   : > { %2782 = vtanh.f32 %v1421_v48  ;;  %1620 = vmatmul.mubr.f32.vlgmr.msra.gmra.mrb[32].mxu0 %v1512_v45 }
 0x36b   : > { %2784 = vtanh.f32 %v1420_v23  ;;  %1625 = vmatprep.mubr.f32.mxu0 %v3037_v54 }
 0x36c   : > { %v2779_v7 = vpop.eup %2778 }
 0x36d   : > { %v2781_v52 = vpop.eup %2780  ;;  %v2326_v17 = vpop.f32.mrb[70].mxu1  ;;  %v1483_v34 = vmul.f32 0.5, %v2779_v7 }
 0x36e   : > { %v1482_v53 = vmul.f32 0.5, %v2781_v52  ;;  %v1293_v55 = vadd.f32 %v2326_v17, %v3610_v27  ;;  %v1287_v30 = vpop.f32.mrb[71].mxu1  ;;  %1626 = vmatmul.mubr.f32.gmra.mrb[34].mxu0 %v1513_v51 }
 0x36f   : > { %v1288_v56 = vadd.f32 %v3610_v27, %v1287_v30  ;;  %1631 = vmatprep.mubr.f32.mxu0 %v3037_v54  ;;  %v1515_v32 = vadd.f32 0.5, %v1483_v34 }
 0x370   : > { %v1423_v57 = vmul.f32 0.5, %v1293_v55  ;;  %v1514_v58 = vadd.f32 0.5, %v1482_v53 }
 0x371   : > { %v1422_v25 = vmul.f32 0.5, %v1288_v56 }
 0x372   : > { %2786 = vtanh.f32 %v1423_v57  ;;  %1632 = vmatmul.mubr.f32.gmra.mrb[36].mxu0 %v1514_v58 }
 0x373   : > { %2788 = vtanh.f32 %v1422_v25  ;;  %1637 = vmatprep.mubr.f32.mxu0 %v3037_v54 }
 0x374   : > { %v2783_v47 = vpop.eup %2782 }
 0x375   : > { %v2785_v62 = vpop.eup %2784  ;;  %v2329_v63 = vpop.f32.mrb[72].mxu1  ;;  %v1485_v4 = vmul.f32 0.5, %v2783_v47 }
 0x376   : > { %v1484_v60 = vmul.f32 0.5, %v2785_v62  ;;  %v1303_v0 = vadd.f32 %v2329_v63, %v3610_v27  ;;  %v1297_v2 = vpop.f32.mrb[73].mxu1  ;;  %1638 = vmatmul.mubr.f32.gmra.mrb[38].mxu0 %v1515_v32 }
 0x377   : > { %v1298_v3 = vadd.f32 %v3610_v27, %v1297_v2  ;;  %1643 = vmatprep.mubr.f32.mxu0 %v3037_v54  ;;  %v1517_v8 = vadd.f32 0.5, %v1485_v4 }
 0x378   : > { %v1425_v19 = vmul.f32 0.5, %v1303_v0  ;;  %v1516_v5 = vadd.f32 0.5, %v1484_v60 }
 0x379   : > { %v1424_v6 = vmul.f32 0.5, %v1298_v3 }
 0x37a   : > { %2790 = vtanh.f32 %v1425_v19  ;;  %1644 = vmatmul.mubr.f32.gmra.mrb[40].mxu0 %v1516_v5 }
 0x37b   : > { %2792 = vtanh.f32 %v1424_v6  ;;  %1649 = vmatprep.mubr.f32.mxu0 %v3037_v54 }
 0x37c   : > { %v2787_v41 = vpop.eup %2786 }
 0x37d   : > { %v2789_v9 = vpop.eup %2788  ;;  %v2332_v10 = vpop.f32.mrb[74].mxu1  ;;  %v1487_v14 = vmul.f32 0.5, %v2787_v41 }
 0x37e   : > { %v1486_v12 = vmul.f32 0.5, %v2789_v9  ;;  %v1313_v38 = vadd.f32 %v2332_v10, %v3610_v27  ;;  %v1307_v13 = vpop.f32.mrb[75].mxu1  ;;  %1650 = vmatmul.mubr.f32.gmra.mrb[42].mxu0 %v1517_v8 }
 0x37f   : > { %v1308_v46 = vadd.f32 %v3610_v27, %v1307_v13  ;;  %1655 = vmatprep.mubr.f32.mxu0 %v3037_v54  ;;  %v1519_v20 = vadd.f32 0.5, %v1487_v14 }
 0x380   : > { %v1427_v15 = vmul.f32 0.5, %v1313_v38  ;;  %v1518_v16 = vadd.f32 0.5, %v1486_v12 }
 0x381   : > { %v1426_v50 = vmul.f32 0.5, %v1308_v46 }
 0x382   : > { %2794 = vtanh.f32 %v1427_v15  ;;  %1656 = vmatmul.mubr.f32.gmra.mrb[44].mxu0 %v1518_v16 }
 0x383   : > { %2796 = vtanh.f32 %v1426_v50  ;;  %1661 = vmatprep.mubr.f32.mxu0 %v3037_v54 }
 0x384   : > { %v2791_v26 = vpop.eup %2790 }
 0x385   : > { %v2793_v21 = vpop.eup %2792  ;;  %v2335_v1 = vpop.f32.mrb[76].mxu1  ;;  %v1489_v33 = vmul.f32 0.5, %v2791_v26 }
 0x386   : > { %v1488_v28 = vmul.f32 0.5, %v2793_v21  ;;  %v1323_v29 = vadd.f32 %v2335_v1, %v3610_v27  ;;  %v1317_v31 = vpop.f32.mrb[77].mxu1  ;;  %1662 = vmatmul.mubr.f32.gmra.mrb[46].mxu0 %v1519_v20 }
 0x387   : > { %v1318_v11 = vadd.f32 %v3610_v27, %v1317_v31  ;;  %1667 = vmatprep.mubr.f32.mxu0 %v3037_v54  ;;  %v1521_v37 = vadd.f32 0.5, %v1489_v33 }
 0x388   : > { %v1429_v59 = vmul.f32 0.5, %v1323_v29  ;;  %v1520_v22 = vadd.f32 0.5, %v1488_v28 }
 0x389   : > { %v1428_v35 = vmul.f32 0.5, %v1318_v11 }
 0x38a   : > { %2798 = vtanh.f32 %v1429_v59  ;;  %1668 = vmatmul.mubr.f32.gmra.mrb[48].mxu0 %v1520_v22 }
 0x38b   : > { %2800 = vtanh.f32 %v1428_v35  ;;  %1673 = vmatprep.mubr.f32.mxu0 %v3037_v54 }
 0x38c   : > { %v2795_v36 = vpop.eup %2794 }
 0x38d   : > { %v2797_v18 = vpop.eup %2796  ;;  %v2338_v39 = vpop.f32.mrb[78].mxu1  ;;  %v1491_v44 = vmul.f32 0.5, %v2795_v36 }
 0x38e   : > { %v1490_v40 = vmul.f32 0.5, %v2797_v18  ;;  %v1333_v42 = vadd.f32 %v2338_v39, %v3610_v27  ;;  %v1327_v49 = vpop.f32.mrb[79].mxu1  ;;  %1674 = vmatmul.mubr.f32.gmra.mrb[50].mxu0 %v1521_v37 }
 0x38f   : > { %v1328_v43 = vadd.f32 %v3610_v27, %v1327_v49  ;;  %1679 = vmatprep.mubr.f32.mxu0 %v3037_v54  ;;  %v1523_v17 = vadd.f32 0.5, %v1491_v44 }
 0x390   : > { %v1431_v61 = vmul.f32 0.5, %v1333_v42  ;;  %v1522_v24 = vadd.f32 0.5, %v1490_v40 }
 0x391   : > { %v1430_v45 = vmul.f32 0.5, %v1328_v43  ;;  %v2341_v48 = vpop.f32.mrb[80].mxu1 }
 0x392   : > { %2802 = vtanh.f32 %v1431_v61  ;;  %1680 = vmatmul.mubr.f32.gmra.mrb[52].mxu0 %v1522_v24  ;;  %v1337_v23 = vpop.f32.mrb[81].mxu1  ;;  %v1343_v7 = vadd.f32 %v2341_v48, %v3610_v27 }
 0x393   : > { %2804 = vtanh.f32 %v1430_v45  ;;  %v1338_v51 = vadd.f32 %v3610_v27, %v1337_v23  ;;  %1685 = vmatprep.mubr.f32.mxu0 %v3037_v54 }
 0x394   : > { %v2799_v52 = vpop.eup %2798  ;;  %v1433_v57 = vmul.f32 0.5, %v1343_v7 }
 0x395   : > { %v2801_v53 = vpop.eup %2800  ;;  %v1432_v55 = vmul.f32 0.5, %v1338_v51  ;;  %v2344_v30 = vpop.f32.mrb[82].mxu1  ;;  %v1493_v25 = vmul.f32 0.5, %v2799_v52 }
 0x396   : > { %v1492_v56 = vmul.f32 0.5, %v2801_v53  ;;  %1686 = vmatmul.mubr.f32.gmra.mrb[54].mxu0 %v1523_v17  ;;  %v1347_v34 = vpop.f32.mrb[83].mxu1  ;;  %v1353_v63 = vadd.f32 %v2344_v30, %v3610_v27 }
 0x397   : > { %2806 = vtanh.f32 %v1432_v55  ;;  %1691 = vmatprep.mubr.f32.mxu0 %v3037_v54  ;;  %v1348_v58 = vadd.f32 %v3610_v27, %v1347_v34  ;;  %v1525_v2 = vadd.f32 0.5, %v1493_v25 }
 0x398   : > { %v1524_v47 = vadd.f32 0.5, %v1492_v56  ;;  %2808 = vtanh.f32 %v1433_v57  ;;  %v1435_v6 = vmul.f32 0.5, %v1353_v63 }
 0x399   : > { %v2347_v32 = vpop.f32.mrb[84].mxu1  ;;  %v1434_v60 = vmul.f32 0.5, %v1348_v58 }
 0x39a   : > { %1692 = vmatmul.mubr.f32.gmra.mrb[56].mxu0 %v1524_v47  ;;  %v1357_v62 = vpop.f32.mrb[85].mxu1  ;;  %v1363_v13 = vadd.f32 %v2347_v32, %v3610_v27 }
 0x39b   : > { %1697 = vmatprep.mubr.f32.mxu0 %v3037_v54  ;;  %2810 = vtanh.f32 %v1434_v60  ;;  %v1358_v41 = vadd.f32 %v3610_v27, %v1357_v62 }
 0x39c   : > { %v2803_v0 = vpop.eup %2802  ;;  %2812 = vtanh.f32 %v1435_v6  ;;  %v1437_v20 = vmul.f32 0.5, %v1363_v13 }
 0x39d   : > { %v2805_v3 = vpop.eup %2804  ;;  %v2350_v4 = vpop.f32.mrb[86].mxu1  ;;  %v1495_v8 = vmul.f32 0.5, %v2803_v0  ;;  %v1436_v46 = vmul.f32 0.5, %v1358_v41 }
 0x39e   : > { %v1494_v19 = vmul.f32 0.5, %v2805_v3  ;;  %1698 = vmatmul.mubr.f32.gmra.mrb[58].mxu0 %v1525_v2  ;;  %v1367_v5 = vpop.f32.mrb[87].mxu1  ;;  %v1373_v33 = vadd.f32 %v2350_v4, %v3610_v27 }
 0x39f   : > { %1703 = vmatprep.mubr.f32.mxu0 %v3037_v54  ;;  %v1527_v15 = vadd.f32 0.5, %v1495_v8  ;;  %2814 = vtanh.f32 %v1436_v46  ;;  %v1368_v21 = vadd.f32 %v3610_v27, %v1367_v5 }
 0x3a0   : > { %v1526_v9 = vadd.f32 0.5, %v1494_v19  ;;  %2816 = vtanh.f32 %v1437_v20  ;;  %v1439_v39 = vmul.f32 0.5, %v1373_v33  ;;  %v1545_v33 = vlaneseq }
 0x3a1   : > { %v2807_v10 = vpop.eup %2806  ;;  %v2353_v12 = vpop.f32.mrb[88].mxu1  ;;  %v1438_v59 = vmul.f32 0.5, %v1368_v21 }
 0x3a2   : > { %1704 = vmatmul.mubr.f32.gmra.mrb[60].mxu0 %v1526_v9  ;;  %v1377_v38 = vpop.f32.mrb[89].mxu1  ;;  %v1496_v14 = vmul.f32 0.5, %v2807_v10  ;;  %v2809_v16 = vpop.eup %2808  ;;  %v1383_v44 = vadd.f32 %v2353_v12, %v3610_v27 }
 0x3a3   : > { %1709 = vmatprep.mubr.f32.mxu0 %v3037_v54  ;;  %v1497_v1 = vmul.f32 0.5, %v2809_v16  ;;  %2818 = vtanh.f32 %v1438_v59  ;;  %v1378_v40 = vadd.f32 %v3610_v27, %v1377_v38  ;;  %v1546_v59 = vshrl.u32 %v1545_v33, 7 }
 0x3a4   : > { %v1528_v28 = vadd.f32 0.5, %v1496_v14  ;;  %2820 = vtanh.f32 %v1439_v39  ;;  %v1441_v23 = vmul.f32 0.5, %v1383_v44 }
 0x3a5   : > { %v2356_v50 = vpop.f32.mrb[90].mxu1  ;;  %v2811_v29 = vpop.eup %2810  ;;  %v1529_v35 = vadd.f32 0.5, %v1497_v1  ;;  %v1440_v61 = vmul.f32 0.5, %v1378_v40 }
 0x3a6   : > { %1710 = vmatmul.mubr.f32.gmra.mrb[62].mxu0 %v1527_v15  ;;  %v1387_v26 = vpop.f32.mrb[91].mxu1  ;;  %v1498_v22 = vmul.f32 0.5, %v2811_v29  ;;  %v2813_v36 = vpop.eup %2812  ;;  %v1393_v53 = vadd.f32 %v2356_v50, %v3610_v27 }
 0x3a7   : > { %1715 = vmatprep.mubr.f32.mxu0 %v3037_v54  ;;  %v1499_v42 = vmul.f32 0.5, %v2813_v36  ;;  %2822 = vtanh.f32 %v1440_v61  ;;  %v1388_v7 = vadd.f32 %v3610_v27, %v1387_v26  ;;  %v1551_v36 = vsub.s32 1, %v1546_v59 }
 0x3a8   : > { %v1530_v49 = vadd.f32 0.5, %v1498_v22  ;;  %2824 = vtanh.f32 %v1441_v23  ;;  %v1443_v57 = vmul.f32 0.5, %v1393_v53  ;;  %v1547_v22 = vsub.s32 0, %v1546_v59 }
 0x3a9   : > { %v2359_v31 = vpop.f32.mrb[92].mxu1  ;;  %v2815_v43 = vpop.eup %2814  ;;  %v1531_v45 = vadd.f32 0.5, %v1499_v42  ;;  %v1442_v55 = vmul.f32 0.5, %v1388_v7 }
 0x3aa   : > { %1716 = vmatmul.mubr.f32.gmra.mrb[64].mxu0 %v1528_v28  ;;  %v1397_v11 = vpop.f32.mrb[93].mxu1  ;;  %v1500_v24 = vmul.f32 0.5, %v2815_v43  ;;  %v2817_v48 = vpop.eup %2816  ;;  %v1403_v62 = vadd.f32 %v2359_v31, %v3610_v27 }
 0x3ab   : > { %1721 = vmatprep.mubr.f32.mxu0 %v3037_v54  ;;  %v1501_v51 = vmul.f32 0.5, %v2817_v48  ;;  %2826 = vtanh.f32 %v1442_v55  ;;  %v1398_v58 = vadd.f32 %v3610_v27, %v1397_v11 }
 0x3ac   : > { %v1532_v52 = vadd.f32 0.5, %v1500_v24  ;;  %2828 = vtanh.f32 %v1443_v57  ;;  %v1445_v3 = vmul.f32 0.5, %v1403_v62 }
 0x3ad   : > { %v2362_v37 = vpop.f32.mrb[94].mxu1  ;;  %v2819_v17 = vpop.eup %2818  ;;  %v1533_v56 = vadd.f32 0.5, %v1501_v51  ;;  %v1444_v63 = vmul.f32 0.5, %v1398_v58 }
 0x3ae   : > { %1722 = vmatmul.mubr.f32.gmra.mrb[66].mxu0 %v1529_v35  ;;  %v1407_v18 = vpop.f32.mrb[95].mxu1  ;;  %v1502_v30 = vmul.f32 0.5, %v2819_v17  ;;  %v2821_v34 = vpop.eup %2820  ;;  %v1413_v41 = vadd.f32 %v2362_v37, %v3610_v27  ;;  %v434_v35 = vld [vmem:[%s3901_s3 + $0x3] sm:$0x3] }
 0x3af   : > { %1727 = vmatprep.mubr.f32.mxu0 %v3037_v54  ;;  %v1503_v25 = vmul.f32 0.5, %v2821_v34  ;;  %2830 = vtanh.f32 %v1444_v63  ;;  %v1408_v4 = vadd.f32 %v3610_v27, %v1407_v18  ;;  %v3678_v37 = vrot.slane %v434_v35, %v1547_v22 }
 0x3b0   : > { %v1534_v47 = vadd.f32 0.5, %v1502_v30  ;;  %2832 = vtanh.f32 %v1445_v3  ;;  %v1447_v38 = vmul.f32 0.5, %v1413_v41  ;;  %v3680_v18 = vrot.slane %v434_v35, %v1551_v36 }
 0x3b1   : > { %v2823_v32 = vpop.eup %2822  ;;  %v1535_v0 = vadd.f32 0.5, %v1503_v25  ;;  %v1446_v8 = vmul.f32 0.5, %v1408_v4 }
 0x3b2   : > { %1728 = vmatmul.mubr.f32.gmra.mrb[68].mxu0 %v1530_v49  ;;  %v1504_v60 = vmul.f32 0.5, %v2823_v32  ;;  %v2825_v2 = vpop.eup %2824 }
 0x3b3   : > { %1733 = vmatprep.mubr.f32.mxu0 %v3037_v54  ;;  %v1505_v19 = vmul.f32 0.5, %v2825_v2  ;;  %2834 = vtanh.f32 %v1446_v8 }
 0x3b4   : > { %v1536_v5 = vadd.f32 0.5, %v1504_v60  ;;  %2836 = vtanh.f32 %v1447_v38 }
 0x3b5   : > { %v2827_v6 = vpop.eup %2826  ;;  %v1537_v10 = vadd.f32 0.5, %v1505_v19 }
 0x3b6   : > { %1734 = vmatmul.mubr.f32.gmra.mrb[70].mxu0 %v1531_v45  ;;  %v1506_v9 = vmul.f32 0.5, %v2827_v6  ;;  %v2829_v12 = vpop.eup %2828 }
 0x3b7   : > { %1739 = vmatprep.mubr.f32.mxu0 %v3037_v54  ;;  %v1507_v13 = vmul.f32 0.5, %v2829_v12 }
 0x3b8   : > { %v1538_v46 = vadd.f32 0.5, %v1506_v9 }
 0x3b9   : > { %v2831_v14 = vpop.eup %2830  ;;  %v1539_v27 = vadd.f32 0.5, %v1507_v13 }
 0x3ba   : > { %1740 = vmatmul.mubr.f32.gmra.mrb[72].mxu0 %v1532_v52  ;;  %v1508_v15 = vmul.f32 0.5, %v2831_v14  ;;  %v2833_v16 = vpop.eup %2832 }
 0x3bb   : > { %1745 = vmatprep.mubr.f32.mxu0 %v3037_v54  ;;  %v1509_v50 = vmul.f32 0.5, %v2833_v16 }
 0x3bc   : > { %v1540_v26 = vadd.f32 0.5, %v1508_v15 }
 0x3bd   : > { %v2835_v20 = vpop.eup %2834  ;;  %v1541_v1 = vadd.f32 0.5, %v1509_v50 }
 0x3be   : > { %1746 = vmatmul.mubr.f32.gmra.mrb[74].mxu0 %v1533_v56  ;;  %v1510_v21 = vmul.f32 0.5, %v2835_v20  ;;  %v2837_v28 = vpop.eup %2836 }
 0x3bf   : > { %1751 = vmatprep.mubr.f32.mxu0 %v3037_v54  ;;  %v1511_v29 = vmul.f32 0.5, %v2837_v28 }
 0x3c0   : > { %v1542_v31 = vadd.f32 0.5, %v1510_v21 }
 0x3c1   : > { %v1543_v11 = vadd.f32 0.5, %v1511_v29 }
 0x3c2   : > { %1752 = vmatmul.mubr.f32.gmra.mrb[76].mxu0 %v1534_v47 }
 0x3c3   : > { %1757 = vmatprep.mubr.f32.mxu0 %v3037_v54 }
 0x3c6   : > { %1758 = vmatmul.mubr.f32.gmra.mrb[78].mxu0 %v1535_v0 }
 0x3c7   : > { %1763 = vmatprep.mubr.f32.mxu0 %v3037_v54 }
 0x3ca   : > { %1764 = vmatmul.mubr.f32.gmra.mrb[80].mxu0 %v1536_v5 }
 0x3cb   : > { %1769 = vmatprep.mubr.f32.mxu0 %v3037_v54 }
 0x3ce   : > { %1770 = vmatmul.mubr.f32.gmra.mrb[82].mxu0 %v1537_v10 }
 0x3cf   : > { %1775 = vmatprep.mubr.f32.mxu0 %v3037_v54 }
 0x3d2   : > { %1776 = vmatmul.mubr.f32.gmra.mrb[84].mxu0 %v1538_v46 }
 0x3d3   : > { %1781 = vmatprep.mubr.f32.mxu0 %v3037_v54 }
 0x3d6   : > { %1782 = vmatmul.mubr.f32.gmra.mrb[86].mxu0 %v1539_v27 }
 0x3d7   : > { %1787 = vmatprep.mubr.f32.mxu0 %v3037_v54 }
 0x3da   : > { %1788 = vmatmul.mubr.f32.gmra.mrb[88].mxu0 %v1540_v26 }
 0x3db   : > { %1793 = vmatprep.mubr.f32.mxu0 %v3037_v54 }
 0x3de   : > { %1794 = vmatmul.mubr.f32.gmra.mrb[90].mxu0 %v1541_v1 }
 0x3df   : > { %1799 = vmatprep.mubr.f32.mxu0 %v3037_v54 }
 0x3e2   : > { %1800 = vmatmul.mubr.f32.gmra.mrb[92].mxu0 %v1542_v31 }
 0x3e3   : > { %1805 = vmatprep.mubr.f32.mxu0 %v3037_v54 }
 0x3e6   : > { %1806 = vmatmul.mubr.f32.gmra.mrb[94].mxu0 %v1543_v11 }
 0x43d   : > { %v1621_v39 = vpop.f32.mrb[32].mxu0 }
 0x43e   : > { %v1622_v54 = vadd.f32 %v1621_v39, %v3678_v37  ;;  %v1623_v40 = vpop.f32.mrb[33].mxu0 }
 0x43f   : > { %v1624_v42 = vadd.f32 %v1623_v40, %v3680_v18 }
 0x440   : > { %1812 = vst [vmem:[%s3686_s14] sm:$0xff] %v1622_v54 }
 0x441   : > { %1813 = vst [vmem:[%s3686_s14 + $0x8] sm:$0xff] %v1624_v42  ;;  %v1627_v49 = vpop.f32.mrb[34].mxu0 }
 0x442   : > { %v1628_v43 = vadd.f32 %v1627_v49, %v3678_v37  ;;  %v1629_v44 = vpop.f32.mrb[35].mxu0 }
 0x443   : > { %v1630_v61 = vadd.f32 %v1629_v44, %v3680_v18 }
 0x444   : > { %2937 = shalt.err (!%p2934_p2)
}
 0x445   : > { %s2938_s29 = scalar_lea.hbm %s3695_s26, 4096  ;;  %s2942_s11 = scalar_lea.hbm %s3903_s5, 8192 }
 0x446   : > { %p2939_p13 = scmp.ne.s32.totalorder %s3695_s26, %s2938_s29  ;;  %p2943_p4 = scmp.lt.u32.totalorder %s3695_s26, %s3903_s5 }
 0x447   : > { %p2944_p7 = scmp.lt.u32.totalorder %s2942_s11, %s2938_s29  ;;  %p2946_p11 = scmp.lt.u32.totalorder %s2938_s29, %s3695_s26 }
 0x448   : > { %p2940_p6 = pnand %p2939_p13, %p3917_p0 }
 0x449   : > { %p2945_p8 = por %p2944_p7, %p2943_p4 }
 0x44a   : > { %p2941_p10 = pneg %p2940_p6 }
 0x44b   : > { %p2947_p1 = por %p2946_p11, %p2945_p8 }
 0x44d   : > { %p2948_p3 = pnand %p2947_p1, %p2941_p10 }
 0x44f   : > { %2951 = shalt.err (!%p2948_p3)
}
 0x450   : > { %s3039_s24 = smov 128   ;;  %s3040_s10 = smov 8   ;;  %1814 = vst [vmem:[%s3686_s14 + $0x10] sm:$0xff] %v1628_v43  ;;  %1815 = vst [vmem:[%s3686_s14 + $0x18] sm:$0xff] %v1630_v61  ;;  %v1633_v24 = vpop.f32.mrb[36].mxu0 }
 0x451   : > { %2550 = dma.vmem_to_hbm [thread:$0]  (%p3917_p0), %s3697_s7, 4096, %s3695_s26, %s1882_s23, %s3039_s24, %s3039_s24, %s3040_s10   ;;  %v1634_v45 = vadd.f32 %v1633_v24, %v3678_v37  ;;  %v1635_v48 = vpop.f32.mrb[37].mxu0 }
 0x452   : > { %v1636_v23 = vadd.f32 %v1635_v48, %v3680_v18  ;;  %v1639_v7 = vpop.f32.mrb[38].mxu0  ;;  %s2066_s7 = sshll.u32 %s3095_s22, 13  ;;  %s1896_s26 = sshll.u32 %s3686_s14, 4  ;;  %s3851_s26 = int_to_ptr.vmem [resolvable:$true] %s1896_s26 }
 0x453   : > { %1816 = vst [vmem:[%s3686_s14 + $0x20] sm:$0xff] %v1634_v45  ;;  %v1640_v51 = vadd.f32 %v1639_v7, %v3678_v37  ;;  %v1641_v52 = vpop.f32.mrb[39].mxu0  ;;  %s3849_s12 = scalar_lea.hbm %s3902_s4, %s2066_s7  ;;  %s1877_s22 = scalar_lea.sflag [#allocation4], %s3246_s17 }
 0x454   : > { %1817 = vst [vmem:[%s3686_s14 + $0x28] sm:$0xff] %v1636_v23  ;;  %v1642_v17 = vadd.f32 %v1641_v52, %v3680_v18  ;;  %v1645_v53 = vpop.f32.mrb[40].mxu0  ;;  %s2952_s13 = scalar_lea.vmem %s3851_s26, 8192  ;;  %s3041_s29 = smov [#allocation8]  }
 0x455   : > { %1818 = vst [vmem:[%s3686_s14 + $0x30] sm:$0xff] %v1640_v51  ;;  %v1646_v55 = vadd.f32 %v1645_v53, %v3678_v37  ;;  %v1647_v30 = vpop.f32.mrb[41].mxu0  ;;  %p2953_p5 = scmp.ne.s32.totalorder %s3851_s26, %s2952_s13  ;;  %s2956_s8 = sshll.u32 %s3041_s29, 4  ;;  %s2957_s8 = int_to_ptr.vmem [resolvable:$false] %s2956_s8 }
 0x456   : > { %1819 = vst [vmem:[%s3686_s14 + $0x38] sm:$0xff] %v1642_v17  ;;  %v1648_v56 = vadd.f32 %v1647_v30, %v3680_v18  ;;  %v1651_v34 = vpop.f32.mrb[42].mxu0  ;;  %s2958_s9 = scalar_lea.vmem %s2957_s8, 16384  ;;  %p2959_p2 = scmp.lt.s32.totalorder %s3851_s26, %s2957_s8 }
 0x457   : > { %1820 = vst [vmem:[%s3686_s14 + $0x40] sm:$0xff] %v1646_v55  ;;  %v1652_v57 = vadd.f32 %v1651_v34, %v3678_v37  ;;  %v1653_v58 = vpop.f32.mrb[43].mxu0  ;;  %p2954_p9 = pnand %p2953_p5, %p3917_p0  ;;  %p2960_p13 = scmp.lt.s32.totalorder %s2958_s9, %s2952_s13 }
 0x458   : > { %1821 = vst [vmem:[%s3686_s14 + $0x48] sm:$0xff] %v1648_v56  ;;  %v1654_v25 = vadd.f32 %v1653_v58, %v3680_v18  ;;  %v1657_v47 = vpop.f32.mrb[44].mxu0 }
 0x459   : > { %1822 = vst [vmem:[%s3686_s14 + $0x50] sm:$0xff] %v1652_v57  ;;  %v1658_v32 = vadd.f32 %v1657_v47, %v3678_v37  ;;  %v1659_v62 = vpop.f32.mrb[45].mxu0  ;;  %p2955_p12 = pneg %p2954_p9  ;;  %p2961_p6 = por %p2960_p13, %p2959_p2 }
 0x45a   : > { %1823 = vst [vmem:[%s3686_s14 + $0x58] sm:$0xff] %v1654_v25  ;;  %v1660_v63 = vadd.f32 %v1659_v62, %v3680_v18  ;;  %v1663_v60 = vpop.f32.mrb[46].mxu0 }
 0x45b   : > { %1824 = vst [vmem:[%s3686_s14 + $0x60] sm:$0xff] %v1658_v32  ;;  %v1664_v0 = vadd.f32 %v1663_v60, %v3678_v37  ;;  %v1665_v2 = vpop.f32.mrb[47].mxu0  ;;  %p2962_p10 = pnand %p2961_p6, %p2955_p12 }
 0x45c   : > { %1825 = vst [vmem:[%s3686_s14 + $0x68] sm:$0xff] %v1660_v63  ;;  %v1666_v3 = vadd.f32 %v1665_v2, %v3680_v18 }
 0x45d   : > { %1826 = vst [vmem:[%s3686_s14 + $0x70] sm:$0xff] %v1664_v0  ;;  %v1669_v4 = vpop.f32.mrb[48].mxu0 }
 0x45e   : > { %1827 = vst [vmem:[%s3686_s14 + $0x78] sm:$0xff] %v1666_v3  ;;  %v1670_v19 = vadd.f32 %v1669_v4, %v3678_v37  ;;  %v1671_v5 = vpop.f32.mrb[49].mxu0 }
 0x45f   : > { %v1672_v6 = vadd.f32 %v1671_v5, %v3680_v18 }
 0x460   : > { %1828 = vst [vmem:[%s3686_s14 + $0x80] sm:$0xff] %v1670_v19 }
 0x461   : > { %1829 = vst [vmem:[%s3686_s14 + $0x88] sm:$0xff] %v1672_v6  ;;  %v1675_v41 = vpop.f32.mrb[50].mxu0 }
 0x462   : > { %v1676_v8 = vadd.f32 %v1675_v41, %v3678_v37  ;;  %v1677_v9 = vpop.f32.mrb[51].mxu0 }
 0x463   : > { %v1678_v10 = vadd.f32 %v1677_v9, %v3680_v18 }
 0x464   : > { %1830 = vst [vmem:[%s3686_s14 + $0x90] sm:$0xff] %v1676_v8 }
 0x465   : > { %1831 = vst [vmem:[%s3686_s14 + $0x98] sm:$0xff] %v1678_v10  ;;  %v1681_v12 = vpop.f32.mrb[52].mxu0 }
 0x466   : > { %v1682_v38 = vadd.f32 %v1681_v12, %v3678_v37  ;;  %v1683_v13 = vpop.f32.mrb[53].mxu0 }
 0x467   : > { %v1684_v46 = vadd.f32 %v1683_v13, %v3680_v18 }
 0x468   : > { %1832 = vst [vmem:[%s3686_s14 + $0xa0] sm:$0xff] %v1682_v38 }
 0x469   : > { %1833 = vst [vmem:[%s3686_s14 + $0xa8] sm:$0xff] %v1684_v46  ;;  %v1687_v14 = vpop.f32.mrb[54].mxu0 }
 0x46a   : > { %v1688_v15 = vadd.f32 %v1687_v14, %v3678_v37  ;;  %v1689_v27 = vpop.f32.mrb[55].mxu0 }
 0x46b   : > { %v1690_v16 = vadd.f32 %v1689_v27, %v3680_v18 }
 0x46c   : > { %1834 = vst [vmem:[%s3686_s14 + $0xb0] sm:$0xff] %v1688_v15 }
 0x46d   : > { %1835 = vst [vmem:[%s3686_s14 + $0xb8] sm:$0xff] %v1690_v16  ;;  %v1693_v50 = vpop.f32.mrb[56].mxu0 }
 0x46e   : > { %v1694_v26 = vadd.f32 %v1693_v50, %v3678_v37  ;;  %v1695_v20 = vpop.f32.mrb[57].mxu0 }
 0x46f   : > { %v1696_v21 = vadd.f32 %v1695_v20, %v3680_v18 }
 0x470   : > { %1836 = vst [vmem:[%s3686_s14 + $0xc0] sm:$0xff] %v1694_v26 }
 0x471   : > { %1837 = vst [vmem:[%s3686_s14 + $0xc8] sm:$0xff] %v1696_v21  ;;  %v1699_v1 = vpop.f32.mrb[58].mxu0 }
 0x472   : > { %v1700_v28 = vadd.f32 %v1699_v1, %v3678_v37  ;;  %v1701_v29 = vpop.f32.mrb[59].mxu0 }
 0x473   : > { %v1702_v31 = vadd.f32 %v1701_v29, %v3680_v18 }
 0x474   : > { %1838 = vst [vmem:[%s3686_s14 + $0xd0] sm:$0xff] %v1700_v28 }
 0x475   : > { %1839 = vst [vmem:[%s3686_s14 + $0xd8] sm:$0xff] %v1702_v31  ;;  %v1705_v11 = vpop.f32.mrb[60].mxu0 }
 0x476   : > { %v1706_v33 = vadd.f32 %v1705_v11, %v3678_v37  ;;  %v1707_v59 = vpop.f32.mrb[61].mxu0 }
 0x477   : > { %v1708_v22 = vadd.f32 %v1707_v59, %v3680_v18 }
 0x478   : > { %1840 = vst [vmem:[%s3686_s14 + $0xe0] sm:$0xff] %v1706_v33 }
 0x479   : > { %1841 = vst [vmem:[%s3686_s14 + $0xe8] sm:$0xff] %v1708_v22  ;;  %v1711_v35 = vpop.f32.mrb[62].mxu0 }
 0x47a   : > { %v1712_v36 = vadd.f32 %v1711_v35, %v3678_v37  ;;  %v1713_v39 = vpop.f32.mrb[63].mxu0 }
 0x47b   : > { %v1714_v54 = vadd.f32 %v1713_v39, %v3680_v18 }
 0x47c   : > { %1842 = vst [vmem:[%s3686_s14 + $0xf0] sm:$0xff] %v1712_v36 }
 0x47d   : > { %1843 = vst [vmem:[%s3686_s14 + $0xf8] sm:$0xff] %v1714_v54  ;;  %v1717_v40 = vpop.f32.mrb[64].mxu0 }
 0x47e   : > { %v1718_v42 = vadd.f32 %v1717_v40, %v3678_v37  ;;  %v1719_v49 = vpop.f32.mrb[65].mxu0 }
 0x47f   : > { %v1720_v43 = vadd.f32 %v1719_v49, %v3680_v18 }
 0x480   : > { %1844 = vst [vmem:[%s3686_s14 + $0x100] sm:$0xff] %v1718_v42 }
 0x481   : > { %1845 = vst [vmem:[%s3686_s14 + $0x108] sm:$0xff] %v1720_v43  ;;  %v1723_v44 = vpop.f32.mrb[66].mxu0 }
 0x482   : > { %v1724_v61 = vadd.f32 %v1723_v44, %v3678_v37  ;;  %v1725_v24 = vpop.f32.mrb[67].mxu0 }
 0x483   : > { %v1726_v45 = vadd.f32 %v1725_v24, %v3680_v18 }
 0x484   : > { %1846 = vst [vmem:[%s3686_s14 + $0x110] sm:$0xff] %v1724_v61 }
 0x485   : > { %1847 = vst [vmem:[%s3686_s14 + $0x118] sm:$0xff] %v1726_v45  ;;  %v1729_v48 = vpop.f32.mrb[68].mxu0 }
 0x486   : > { %v1730_v23 = vadd.f32 %v1729_v48, %v3678_v37  ;;  %v1731_v7 = vpop.f32.mrb[69].mxu0 }
 0x487   : > { %v1732_v51 = vadd.f32 %v1731_v7, %v3680_v18 }
 0x488   : > { %1848 = vst [vmem:[%s3686_s14 + $0x120] sm:$0xff] %v1730_v23 }
 0x489   : > { %1849 = vst [vmem:[%s3686_s14 + $0x128] sm:$0xff] %v1732_v51  ;;  %v1735_v52 = vpop.f32.mrb[70].mxu0 }
 0x48a   : > { %v1736_v17 = vadd.f32 %v1735_v52, %v3678_v37  ;;  %v1737_v53 = vpop.f32.mrb[71].mxu0 }
 0x48b   : > { %v1738_v55 = vadd.f32 %v1737_v53, %v3680_v18 }
 0x48c   : > { %1850 = vst [vmem:[%s3686_s14 + $0x130] sm:$0xff] %v1736_v17 }
 0x48d   : > { %1851 = vst [vmem:[%s3686_s14 + $0x138] sm:$0xff] %v1738_v55  ;;  %v1741_v30 = vpop.f32.mrb[72].mxu0 }
 0x48e   : > { %v1742_v56 = vadd.f32 %v1741_v30, %v3678_v37  ;;  %v1743_v34 = vpop.f32.mrb[73].mxu0 }
 0x48f   : > { %v1744_v57 = vadd.f32 %v1743_v34, %v3680_v18 }
 0x490   : > { %1852 = vst [vmem:[%s3686_s14 + $0x140] sm:$0xff] %v1742_v56 }
 0x491   : > { %1853 = vst [vmem:[%s3686_s14 + $0x148] sm:$0xff] %v1744_v57  ;;  %v1747_v58 = vpop.f32.mrb[74].mxu0 }
 0x492   : > { %v1748_v25 = vadd.f32 %v1747_v58, %v3678_v37  ;;  %v1749_v47 = vpop.f32.mrb[75].mxu0 }
 0x493   : > { %v1750_v32 = vadd.f32 %v1749_v47, %v3680_v18 }
 0x494   : > { %1854 = vst [vmem:[%s3686_s14 + $0x150] sm:$0xff] %v1748_v25 }
 0x495   : > { %1855 = vst [vmem:[%s3686_s14 + $0x158] sm:$0xff] %v1750_v32  ;;  %v1753_v62 = vpop.f32.mrb[76].mxu0 }
 0x496   : > { %v1754_v63 = vadd.f32 %v1753_v62, %v3678_v37  ;;  %v1755_v60 = vpop.f32.mrb[77].mxu0 }
 0x497   : > { %v1756_v0 = vadd.f32 %v1755_v60, %v3680_v18 }
 0x498   : > { %1856 = vst [vmem:[%s3686_s14 + $0x160] sm:$0xff] %v1754_v63 }
 0x499   : > { %1857 = vst [vmem:[%s3686_s14 + $0x168] sm:$0xff] %v1756_v0  ;;  %v1759_v2 = vpop.f32.mrb[78].mxu0 }
 0x49a   : > { %v1760_v3 = vadd.f32 %v1759_v2, %v3678_v37  ;;  %v1761_v4 = vpop.f32.mrb[79].mxu0 }
 0x49b   : > { %v1762_v19 = vadd.f32 %v1761_v4, %v3680_v18 }
 0x49c   : > { %1858 = vst [vmem:[%s3686_s14 + $0x170] sm:$0xff] %v1760_v3 }
 0x49d   : > { %1859 = vst [vmem:[%s3686_s14 + $0x178] sm:$0xff] %v1762_v19  ;;  %v1765_v5 = vpop.f32.mrb[80].mxu0 }
 0x49e   : > { %v1766_v6 = vadd.f32 %v1765_v5, %v3678_v37  ;;  %v1767_v41 = vpop.f32.mrb[81].mxu0 }
 0x49f   : > { %v1768_v8 = vadd.f32 %v1767_v41, %v3680_v18 }
 0x4a0   : > { %1860 = vst [vmem:[%s3686_s14 + $0x180] sm:$0xff] %v1766_v6 }
 0x4a1   : > { %1861 = vst [vmem:[%s3686_s14 + $0x188] sm:$0xff] %v1768_v8  ;;  %v1771_v9 = vpop.f32.mrb[82].mxu0 }
 0x4a2   : > { %v1772_v10 = vadd.f32 %v1771_v9, %v3678_v37  ;;  %v1773_v12 = vpop.f32.mrb[83].mxu0 }
 0x4a3   : > { %v1774_v38 = vadd.f32 %v1773_v12, %v3680_v18 }
 0x4a4   : > { %1862 = vst [vmem:[%s3686_s14 + $0x190] sm:$0xff] %v1772_v10 }
 0x4a5   : > { %1863 = vst [vmem:[%s3686_s14 + $0x198] sm:$0xff] %v1774_v38  ;;  %v1777_v13 = vpop.f32.mrb[84].mxu0 }
 0x4a6   : > { %v1778_v46 = vadd.f32 %v1777_v13, %v3678_v37  ;;  %v1779_v14 = vpop.f32.mrb[85].mxu0 }
 0x4a7   : > { %v1780_v15 = vadd.f32 %v1779_v14, %v3680_v18 }
 0x4a8   : > { %1864 = vst [vmem:[%s3686_s14 + $0x1a0] sm:$0xff] %v1778_v46 }
 0x4a9   : > { %1865 = vst [vmem:[%s3686_s14 + $0x1a8] sm:$0xff] %v1780_v15  ;;  %v1783_v27 = vpop.f32.mrb[86].mxu0 }
 0x4aa   : > { %v1784_v16 = vadd.f32 %v1783_v27, %v3678_v37  ;;  %v1785_v50 = vpop.f32.mrb[87].mxu0 }
 0x4ab   : > { %v1786_v26 = vadd.f32 %v1785_v50, %v3680_v18 }
 0x4ac   : > { %1866 = vst [vmem:[%s3686_s14 + $0x1b0] sm:$0xff] %v1784_v16 }
 0x4ad   : > { %1867 = vst [vmem:[%s3686_s14 + $0x1b8] sm:$0xff] %v1786_v26  ;;  %v1789_v20 = vpop.f32.mrb[88].mxu0 }
 0x4ae   : > { %v1790_v21 = vadd.f32 %v1789_v20, %v3678_v37  ;;  %v1791_v1 = vpop.f32.mrb[89].mxu0 }
 0x4af   : > { %v1792_v28 = vadd.f32 %v1791_v1, %v3680_v18 }
 0x4b0   : > { %1868 = vst [vmem:[%s3686_s14 + $0x1c0] sm:$0xff] %v1790_v21 }
 0x4b1   : > { %1869 = vst [vmem:[%s3686_s14 + $0x1c8] sm:$0xff] %v1792_v28  ;;  %v1795_v29 = vpop.f32.mrb[90].mxu0 }
 0x4b2   : > { %v1796_v31 = vadd.f32 %v1795_v29, %v3678_v37  ;;  %v1797_v11 = vpop.f32.mrb[91].mxu0 }
 0x4b3   : > { %v1798_v33 = vadd.f32 %v1797_v11, %v3680_v18 }
 0x4b4   : > { %1870 = vst [vmem:[%s3686_s14 + $0x1d0] sm:$0xff] %v1796_v31 }
 0x4b5   : > { %1871 = vst [vmem:[%s3686_s14 + $0x1d8] sm:$0xff] %v1798_v33  ;;  %v1801_v59 = vpop.f32.mrb[92].mxu0 }
 0x4b6   : > { %v1802_v22 = vadd.f32 %v1801_v59, %v3678_v37  ;;  %v1803_v35 = vpop.f32.mrb[93].mxu0 }
 0x4b7   : > { %v1804_v36 = vadd.f32 %v1803_v35, %v3680_v18 }
 0x4b8   : > { %1872 = vst [vmem:[%s3686_s14 + $0x1e0] sm:$0xff] %v1802_v22 }
 0x4b9   : > { %1873 = vst [vmem:[%s3686_s14 + $0x1e8] sm:$0xff] %v1804_v36  ;;  %v1807_v39 = vpop.f32.mrb[94].mxu0 }
 0x4ba   : > { %v1808_v54 = vadd.f32 %v1807_v39, %v3678_v37  ;;  %v1809_v40 = vpop.f32.mrb[95].mxu0 }
 0x4bb   : > { %v1810_v42 = vadd.f32 %v1809_v40, %v3680_v18 }
 0x4bc   : > { %1874 = vst [vmem:[%s3686_s14 + $0x1f0] sm:$0xff] %v1808_v54 }
 0x4bd   : > { %1875 = vst [vmem:[%s3686_s14 + $0x1f8] sm:$0xff] %v1810_v42 }
 0x4be   : > { %2965 = shalt.err (!%p2962_p10)
}
 0x4bf   : > { %s2966_s14 = scalar_lea.hbm %s3849_s12, 8192  ;;  %s2970_s6 = scalar_lea.hbm %s3902_s4, 16384 }
 0x4c0   : > { %p2967_p4 = scmp.ne.s32.totalorder %s3849_s12, %s2966_s14  ;;  %p2971_p11 = scmp.lt.u32.totalorder %s3849_s12, %s3902_s4 }
 0x4c1   : > { %p2972_p1 = scmp.lt.u32.totalorder %s2970_s6, %s2966_s14  ;;  %p2974_p5 = scmp.lt.u32.totalorder %s2966_s14, %s3849_s12 }
 0x4c2   : > { %p2968_p7 = pnand %p2967_p4, %p3917_p0 }
 0x4c3   : > { %p2973_p3 = por %p2972_p1, %p2971_p11 }
 0x4c4   : > { %p2969_p8 = pneg %p2968_p7 }
 0x4c5   : > { %p2975_p9 = por %p2974_p5, %p2973_p3 }
 0x4c7   : > { %p2976_p12 = pnand %p2975_p9, %p2969_p8 }
 0x4c9   : > { %2979 = shalt.err (!%p2976_p12)
}
 0x4ca   : > { %s3042_s7 = smov 256   ;;  %s3043_s23 = smov 16  }
 0x4cb   : > { %2549 = dma.vmem_to_hbm [thread:$0]  (%p3917_p0), %s3851_s26, 8192, %s3849_s12, %s1877_s22, %s3042_s7, %s3042_s7, %s3043_s23  }
 0x4cc PF: > { %s1927_s28 = sand.u32 1, %s3014_s18   ;;  %p3918_p2 = scmp.ne.s32.totalorder %s3908_s25, 0 }
 0x4cd   : > { %p3919_p13 = scmp.ge.s32.totalorder %s3026_s21, 2  ;;  %s1928_s13 = scalar_lea.sflag [#allocation4], %s1927_s28 }
 0x4cf   : > { %p2565_p6 = pnand %p3919_p13, %p3918_p2 }
 0x4d1   : > { %3005 = dma.done.wait (!%p2565_p6), %s1928_s13, 8192  }
 0x4d2   : > { %3007 = vsyncadd (!%p2565_p6), %s1928_s13, 4294959104  ;;  %s1937_s29 = scalar_lea.sflag [#allocation10], %s1927_s28 }
 0x4d3   : > { %3009 = dma.done.wait (!%p2565_p6), %s1937_s29, 4096  }
 0x4d4   : > { %3011 = vsyncadd (!%p2565_p6), %s1937_s29, 4294963200  ;;  %p23_p0 = scmp.ge.s32.totalorder %s3184_s16, 4   ;;  %s3920_s18 = smov %s3018_s19 }
 0x4d5   : > { %s3921_s19 = smov %s3022_s20  ;;  %s3922_s20 = smov %s3193_s27 }
 0x4d6   : > { %s3923_s21 = smov %s3184_s16  ;;  %25 = sbr.rel (!%p23_p0) target bundleno = 8 (0x8), region = 106 }
 0x4dd   :  { %1942 = vsyncpa [#allocation3], 1 }
 0x4de   :  { %1944 = vsyncpa [#allocation3 + $0x1], 1 }
 0x4df   :  { %1945 = vsyncpa [#allocation6], 1 }
 0x4e0   :  { %1946 = vsyncpa [#allocation4], 1 }
 0x4e1   :  { %1948 = vsyncpa [#allocation4 + $0x1], 1 }
 0x4e2   :  { %1949 = vsyncpa [#allocation10], 1 }
 0x4e3   :  { %1951 = vsyncpa [#allocation10 + $0x1], 1 }

</bundles_post_ra>
